<compile_context>
chip_gen: v5e
topology: v5e:2x2
jax: 0.10.0
libtpu: 0.0.40
codegen_flags: <defaults>
</compile_context>

<pallas_src>
import functools

import jax
import jax.numpy as jnp
from jax.experimental import pallas as pl
from jax.experimental.pallas import tpu as pltpu


def _round_up(x, m):
    return ((x + m - 1) // m) * m


# ----------------------------------------------------------------------------
# Pallas kernel: fused  out = act( X @ W + b )
# ----------------------------------------------------------------------------
def _matmul_bias_act_kernel(x_ref, w_ref, b_ref, o_ref, *, act, sigmoid_from):
    # bf16 operands, f32 accumulation on the MXU; epilogue stays f32.
    acc = jnp.dot(x_ref[...], w_ref[...], preferred_element_type=jnp.float32)
    acc = acc + b_ref[...]                      # b is (1, Np) -> broadcasts
    if act == "leaky_relu":
        acc = jnp.where(acc >= 0.0, acc, 0.1 * acc)
    elif act == "relu":
        acc = jnp.maximum(acc, 0.0)
    elif act == "sigmoid":
        acc = jax.nn.sigmoid(acc)
    elif act == "split_sigmoid":
        # sigmoid only on columns >= sigmoid_from (mask part of offset_mask).
        col = jax.lax.broadcasted_iota(jnp.int32, acc.shape, 1)
        acc = jnp.where(col >= sigmoid_from, jax.nn.sigmoid(acc), acc)
    # act == "none": identity
    o_ref[...] = acc.astype(o_ref.dtype)


def matmul_bias_act(x, w, b, act="none", out_dtype=jnp.float32,
                    sigmoid_from=0):
    """x: (M, K), w: (K, N), b: (1, N) -> (M, N) with fused activation.

    Lane-dense: N is padded to a multiple of 128 (result sliced back), the
    huge M dimension is tiled with a large row tile and a 'parallel' grid.
    Weight and bias stay resident in VMEM across the whole grid.
    """
    M, K = x.shape
    Kw, N = w.shape
    assert K == Kw

    # --- lane-dense output: pad N up to a multiple of 128 ------------------
    n_pad = _round_up(N, 128)
    if n_pad != N:
        w = jnp.pad(w, ((0, 0), (0, n_pad - N)))
        b = jnp.pad(b, ((0, 0), (0, n_pad - N)))

    # --- row tile: big for HBM roofline, but keep >= 4 grid steps ----------
    tm = 1024
    while tm > 128 and M < 4 * tm:
        tm //= 2
    m_pad = _round_up(M, tm)
    if m_pad != M:
        x = jnp.pad(x, ((0, m_pad - M), (0, 0)))
    grid = (m_pad // tm,)

    # --- bf16 MXU inputs, f32 accumulate ------------------------------------
    xb = x.astype(jnp.bfloat16)
    wb = w.astype(jnp.bfloat16)
    bf = b.astype(jnp.float32)

    flops = 2 * m_pad * K * n_pad
    if act == "sigmoid":
        transcendentals = m_pad * n_pad
    elif act == "split_sigmoid":
        transcendentals = m_pad * (n_pad - sigmoid_from)
    else:
        transcendentals = 0
    bytes_accessed = (m_pad * K * 2 + K * n_pad * 2 + n_pad * 4
                      + m_pad * n_pad * jnp.dtype(out_dtype).itemsize)

    out = pl.pallas_call(
        functools.partial(_matmul_bias_act_kernel, act=act,
                          sigmoid_from=sigmoid_from),
        out_shape=jax.ShapeDtypeStruct((m_pad, n_pad), out_dtype),
        grid=grid,
        in_specs=[
            pl.BlockSpec((tm, K), lambda i: (i, 0)),
            pl.BlockSpec((K, n_pad), lambda i: (0, 0)),   # resident weight
            pl.BlockSpec((1, n_pad), lambda i: (0, 0)),   # resident bias
        ],
        out_specs=pl.BlockSpec((tm, n_pad), lambda i: (i, 0)),
        compiler_params=pltpu.CompilerParams(
            dimension_semantics=("parallel",),
            vmem_limit_bytes=32 * 1024 * 1024),
        cost_estimate=pl.CostEstimate(
            flops=flops, transcendentals=transcendentals,
            bytes_accessed=bytes_accessed),
    )(xb, wb, bf)
    return out[:M, :N]


# ----------------------------------------------------------------------------
# Plain-JAX glue (NHWC)
# ----------------------------------------------------------------------------
def im2col_3x3_nhwc(x):
    """x: (N, H, W, C) -> (N*H*W, C*9); K ordering (c, kh, kw) like PyTorch.

    TODO(synk): fuse the 9-tap patch build into the Pallas kernel with a
    halo'd input block to avoid the 9x HBM inflation of `cols`.
    """
    N, H, W, C = x.shape
    xp = jnp.pad(x, ((0, 0), (1, 1), (1, 1), (0, 0)))
    patches = [xp[:, di:di + H, dj:dj + W, :]
               for di in range(3) for dj in range(3)]
    cols = jnp.stack(patches, axis=-1)                    # (N, H, W, C, 9)
    return cols.reshape(N * H * W, C * 9)


def modulated_deform_sample_nhwc(x, off, msk, k, pad):
    """Bilinear sample of offset-shifted taps, times sigmoid mask.

    x:   (N, H, W, C)            original input (f32)
    off: (N, H, W, C*2*k*k)      per-group offsets, ordering (c, kk, (dy,dx))
    msk: (N, H, W, C*k*k)        per-group mask (already sigmoid'd)
    deformable_groups = C (one channel per group).
    Returns (N, H, W, C, k*k)   -- K ordering (c, tap), matches dc_w layout.
    """
    # TODO(synk): the data-dependent gather stays in plain JAX; a Pallas
    # version would need a manual DMA-gather kernel.
    N, H, W, C = x.shape
    KK = k * k

    off = off.reshape(N, H, W, C, KK, 2)
    dy, dx = off[..., 0], off[..., 1]                     # (N, H, W, C, KK)
    m = msk.reshape(N, H, W, C, KK)

    ki = jnp.arange(k)
    ky = jnp.repeat(ki, k).astype(jnp.float32).reshape(1, 1, 1, 1, KK)
    kx = jnp.tile(ki, k).astype(jnp.float32).reshape(1, 1, 1, 1, KK)
    yy = jnp.arange(H, dtype=jnp.float32).reshape(1, H, 1, 1, 1)
    xx = jnp.arange(W, dtype=jnp.float32).reshape(1, 1, W, 1, 1)
    py = yy - pad + ky + dy                               # (N, H, W, C, KK)
    px = xx - pad + kx + dx

    y0 = jnp.floor(py)
    x0 = jnp.floor(px)
    y1, x1 = y0 + 1.0, x0 + 1.0
    wy1, wx1 = py - y0, px - x0
    wy0, wx0 = 1.0 - wy1, 1.0 - wx1

    xflat = x.reshape(N, H * W * C)                       # NHWC flat image
    c_idx = jnp.arange(C, dtype=jnp.int32).reshape(1, 1, 1, C, 1)

    def corner(yi, xi):
        valid = ((yi >= 0) & (yi < H) & (xi >= 0) & (xi < W)).astype(x.dtype)
        yc = jnp.clip(yi, 0, H - 1).astype(jnp.int32)
        xc = jnp.clip(xi, 0, W - 1).astype(jnp.int32)
        idx = (yc * W + xc) * C + c_idx                   # NHWC flat index
        v = jnp.take_along_axis(xflat, idx.reshape(N, -1), axis=-1)
        return v.reshape(N, H, W, C, KK) * valid

    v00 = corner(y0, x0)
    v01 = corner(y0, x1)
    v10 = corner(y1, x0)
    v11 = corner(y1, x1)
    sampled = (wy0 * wx0 * v00 + wy0 * wx1 * v01 +
               wy1 * wx0 * v10 + wy1 * wx1 * v11)
    return sampled * m


# ----------------------------------------------------------------------------
# STFF forward
# ----------------------------------------------------------------------------
def stff_forward(x_nchw, params, *, in_nc, out_nc, nf, deform_ks=3):
    N, C, H, W = x_nchw.shape
    assert C == in_nc
    KK = deform_ks * deform_ks
    M = N * H * W
    off_cols = in_nc * 2 * KK

    x = x_nchw.transpose(0, 2, 3, 1)                      # NHWC, once (f32)

    # in_conv: Conv2d(in_nc, nf, 3, pad=1) + LeakyReLU(0.1)
    # Build the patch matrix from a bf16 copy (half the HBM bytes for cols).
    cols = im2col_3x3_nhwc(x.astype(jnp.bfloat16))
    f = matmul_bias_act(cols, params["in_w"], params["in_b"],
                        "leaky_relu", out_dtype=jnp.bfloat16)
    f = f.reshape(N, H, W, nf)

    # TODO(synk): SKU_Net definition not provided in the source -> identity.

    # out_conv: Conv2d(nf, nf, 3, pad=1) + LeakyReLU(0.1)
    cols = im2col_3x3_nhwc(f)
    g = matmul_bias_act(cols, params["out_w"], params["out_b"],
                        "leaky_relu", out_dtype=jnp.bfloat16)
    g = g.reshape(N, H, W, nf)

    # offset_mask: ONE conv (as in PyTorch).  Single matmul; sigmoid is fused
    # onto the mask columns only (columns >= in_nc*2*KK) inside the kernel.
    cols = im2col_3x3_nhwc(g)
    off_msk = matmul_bias_act(cols, params["om_w"], params["om_b"],
                              "split_sigmoid", out_dtype=jnp.float32,
                              sigmoid_from=off_cols)
    off = off_msk[:, :off_cols].reshape(N, H, W, off_cols)
    msk = off_msk[:, off_cols:].reshape(N, H, W, in_nc * KK)

    # modulated deformable conv (deformable_groups = in_nc) + ReLU
    sampled = modulated_deform_sample_nhwc(x, off, msk,
                                           deform_ks, deform_ks // 2)
    cols_d = sampled.reshape(M, in_nc * KK)               # (c, tap) ordering
    out = matmul_bias_act(cols_d, params["dc_w"], params["dc_b"],
                          "relu", out_dtype=jnp.float32)
    return out.reshape(N, H, W, out_nc).transpose(0, 3, 1, 2)


def init_params(key, *, in_nc, out_nc, nf, deform_ks=3, base_ks=3):
    """Deterministic synthetic parameters in matmul (K, N) layout.

    K ordering for every conv weight is (c, kh, kw), i.e. a PyTorch weight
    (O, C, kh, kw) maps to w_torch.reshape(O, C*kh*kw).T.
    offset_mask keeps its single-conv layout: N = in_nc*3*KK with the first
    in_nc*2*KK output channels being offsets and the rest masks.
    """
    KK = deform_ks * deform_ks
    BK = base_ks * base_ks
    keys = jax.random.split(key, 4)
    scale = 0.05

    def w(k, kin, kout):
        return scale * jax.random.normal(k, (kin, kout), dtype=jnp.float32)

    return {
        "in_w": w(keys[0], in_nc * BK, nf),
        "in_b": jnp.zeros((1, nf), jnp.float32),
        "out_w": w(keys[1], nf * BK, nf),
        "out_b": jnp.zeros((1, nf), jnp.float32),
        "om_w": w(keys[2], nf * BK, in_nc * 3 * KK),
        "om_b": jnp.zeros((1, in_nc * 3 * KK), jnp.float32),
        "dc_w": w(keys[3], in_nc * KK, out_nc),
        "dc_b": jnp.zeros((1, out_nc), jnp.float32),
    }


if __name__ == "__main__":
    in_nc, out_nc, nf = 4, 4, 8
    N, H, W = 2, 16, 16

    key = jax.random.PRNGKey(0)
    kx, kp = jax.random.split(key)
    x = jax.random.normal(kx, (N, in_nc, H, W), dtype=jnp.float32)
    params = init_params(kp, in_nc=in_nc, out_nc=out_nc, nf=nf)

    fwd = jax.jit(functools.partial(
        stff_forward, in_nc=in_nc, out_nc=out_nc, nf=nf, deform_ks=3))
    y = fwd(x, params)
    jax.block_until_ready(y)
    assert y.shape == (N, out_nc, H, W)
    assert bool(jnp.all(jnp.isfinite(y)))
    assert bool(jnp.all(y >= 0.0))              # final ReLU
    print("KERNEL_OK")
</pallas_src>

<mosaic_0001>
module attributes {stable_mosaic.version = 11 : i64} {
  func.func @_matmul_bias_act_kernel(%arg0: i32, %arg1: memref<128x36xbf16, #tpu.memory_space<vmem>>, %arg2: memref<36x128xbf16, #tpu.memory_space<vmem>>, %arg3: memref<1x128xf32, #tpu.memory_space<vmem>>, %arg4: memref<128x128xbf16, #tpu.memory_space<vmem>>) attributes {dimension_semantics = [#tpu.dimension_semantics<parallel>], iteration_bounds = array<i64: 4>, scalar_prefetch = 0 : i64, scratch_operands = 0 : i64, tpu.core_type = #tpu.core_type<tc>, window_params = [{transform_indices = @transform_0, window_bounds = array<i64: 128, 36>}, {pipeline_mode = #tpu.pipeline_mode<synchronous>, transform_indices = @transform_1, window_bounds = array<i64: 36, 128>}, {pipeline_mode = #tpu.pipeline_mode<synchronous>, transform_indices = @transform_2, window_bounds = array<i64: 1, 128>}, {transform_indices = @transform_3, window_bounds = array<i64: 128, 128>}]} {
    %c0 = arith.constant 0 : index
    %c0_0 = arith.constant 0 : index
    %0 = vector.load %arg1[%c0, %c0_0] : memref<128x36xbf16, #tpu.memory_space<vmem>>, vector<128x36xbf16>
    %c0_1 = arith.constant 0 : index
    %c0_2 = arith.constant 0 : index
    %1 = vector.load %arg2[%c0_1, %c0_2] : memref<36x128xbf16, #tpu.memory_space<vmem>>, vector<36x128xbf16>
    %cst = arith.constant dense<0.000000e+00> : vector<128x128xf32>
    %2 = tpu.matmul %0, %1, %cst {dimension_numbers = #tpu.dot_dimension_numbers<[1], [0], [0], [1], [0, 0, 1, 1], [], []>} : vector<128x36xbf16>, vector<36x128xbf16>, vector<128x128xf32> -> vector<128x128xf32>
    %c0_3 = arith.constant 0 : index
    %c0_4 = arith.constant 0 : index
    %3 = vector.load %arg3[%c0_3, %c0_4] : memref<1x128xf32, #tpu.memory_space<vmem>>, vector<1x128xf32>
    %4 = vector.broadcast %3 : vector<1x128xf32> to vector<128x128xf32>
    %5 = arith.addf %2, %4 : vector<128x128xf32>
    %cst_5 = arith.constant 0.000000e+00 : f32
    %6 = vector.broadcast %cst_5 : f32 to vector<128x128xf32>
    %7 = arith.cmpf oge, %5, %6 : vector<128x128xf32>
    %cst_6 = arith.constant 1.000000e-01 : f32
    %8 = vector.broadcast %cst_6 : f32 to vector<128x128xf32>
    %9 = arith.mulf %8, %5 : vector<128x128xf32>
    %10 = arith.select %7, %5, %9 : vector<128x128xi1>, vector<128x128xf32>
    %11 = arith.truncf %10 : vector<128x128xf32> to vector<128x128xbf16>
    %c0_7 = arith.constant 0 : index
    %c0_8 = arith.constant 0 : index
    %12 = vector.load %arg4[%c0_7, %c0_8] : memref<128x128xbf16, #tpu.memory_space<vmem>>, vector<128x128xbf16>
    tpu.vector_store %arg4[%c0_7, %c0_8], %11 {strides = array<i32>} : memref<128x128xbf16, #tpu.memory_space<vmem>>, vector<128x128xbf16>,
    return
  }
  func.func @transform_0(%arg0: i32) -> (i32, i32) {
    %c0_i32 = arith.constant 0 : i32
    %c0_i32_0 = arith.constant 0 : i32
    return %arg0, %c0_i32 : i32, i32
  }
  func.func @transform_1(%arg0: i32) -> (i32, i32) {
    %c0_i32 = arith.constant 0 : i32
    %c0_i32_0 = arith.constant 0 : i32
    %c0_i32_1 = arith.constant 0 : i32
    return %c0_i32, %c0_i32_0 : i32, i32
  }
  func.func @transform_2(%arg0: i32) -> (i32, i32) {
    %c0_i32 = arith.constant 0 : i32
    %c0_i32_0 = arith.constant 0 : i32
    %c0_i32_1 = arith.constant 0 : i32
    return %c0_i32, %c0_i32_0 : i32, i32
  }
  func.func @transform_3(%arg0: i32) -> (i32, i32) {
    %c0_i32 = arith.constant 0 : i32
    %c0_i32_0 = arith.constant 0 : i32
    return %arg0, %c0_i32 : i32, i32
  }
}

module attributes {stable_mosaic.version = 11 : i64} {
  func.func @_matmul_bias_act_kernel(%arg0: i32, %arg1: memref<128x72xbf16, #tpu.memory_space<vmem>>, %arg2: memref<72x128xbf16, #tpu.memory_space<vmem>>, %arg3: memref<1x128xf32, #tpu.memory_space<vmem>>, %arg4: memref<128x128xbf16, #tpu.memory_space<vmem>>) attributes {dimension_semantics = [#tpu.dimension_semantics<parallel>], iteration_bounds = array<i64: 4>, scalar_prefetch = 0 : i64, scratch_operands = 0 : i64, tpu.core_type = #tpu.core_type<tc>, window_params = [{transform_indices = @transform_0, window_bounds = array<i64: 128, 72>}, {pipeline_mode = #tpu.pipeline_mode<synchronous>, transform_indices = @transform_1, window_bounds = array<i64: 72, 128>}, {pipeline_mode = #tpu.pipeline_mode<synchronous>, transform_indices = @transform_2, window_bounds = array<i64: 1, 128>}, {transform_indices = @transform_3, window_bounds = array<i64: 128, 128>}]} {
    %c0 = arith.constant 0 : index
    %c0_0 = arith.constant 0 : index
    %0 = vector.load %arg1[%c0, %c0_0] : memref<128x72xbf16, #tpu.memory_space<vmem>>, vector<128x72xbf16>
    %c0_1 = arith.constant 0 : index
    %c0_2 = arith.constant 0 : index
    %1 = vector.load %arg2[%c0_1, %c0_2] : memref<72x128xbf16, #tpu.memory_space<vmem>>, vector<72x128xbf16>
    %cst = arith.constant dense<0.000000e+00> : vector<128x128xf32>
    %2 = tpu.matmul %0, %1, %cst {dimension_numbers = #tpu.dot_dimension_numbers<[1], [0], [0], [1], [0, 0, 1, 1], [], []>} : vector<128x72xbf16>, vector<72x128xbf16>, vector<128x128xf32> -> vector<128x128xf32>
    %c0_3 = arith.constant 0 : index
    %c0_4 = arith.constant 0 : index
    %3 = vector.load %arg3[%c0_3, %c0_4] : memref<1x128xf32, #tpu.memory_space<vmem>>, vector<1x128xf32>
    %4 = vector.broadcast %3 : vector<1x128xf32> to vector<128x128xf32>
    %5 = arith.addf %2, %4 : vector<128x128xf32>
    %cst_5 = arith.constant 0.000000e+00 : f32
    %6 = vector.broadcast %cst_5 : f32 to vector<128x128xf32>
    %7 = arith.cmpf oge, %5, %6 : vector<128x128xf32>
    %cst_6 = arith.constant 1.000000e-01 : f32
    %8 = vector.broadcast %cst_6 : f32 to vector<128x128xf32>
    %9 = arith.mulf %8, %5 : vector<128x128xf32>
    %10 = arith.select %7, %5, %9 : vector<128x128xi1>, vector<128x128xf32>
    %11 = arith.truncf %10 : vector<128x128xf32> to vector<128x128xbf16>
    %c0_7 = arith.constant 0 : index
    %c0_8 = arith.constant 0 : index
    %12 = vector.load %arg4[%c0_7, %c0_8] : memref<128x128xbf16, #tpu.memory_space<vmem>>, vector<128x128xbf16>
    tpu.vector_store %arg4[%c0_7, %c0_8], %11 {strides = array<i32>} : memref<128x128xbf16, #tpu.memory_space<vmem>>, vector<128x128xbf16>,
    return
  }
  func.func @transform_0(%arg0: i32) -> (i32, i32) {
    %c0_i32 = arith.constant 0 : i32
    %c0_i32_0 = arith.constant 0 : i32
    return %arg0, %c0_i32 : i32, i32
  }
  func.func @transform_1(%arg0: i32) -> (i32, i32) {
    %c0_i32 = arith.constant 0 : i32
    %c0_i32_0 = arith.constant 0 : i32
    %c0_i32_1 = arith.constant 0 : i32
    return %c0_i32, %c0_i32_0 : i32, i32
  }
  func.func @transform_2(%arg0: i32) -> (i32, i32) {
    %c0_i32 = arith.constant 0 : i32
    %c0_i32_0 = arith.constant 0 : i32
    %c0_i32_1 = arith.constant 0 : i32
    return %c0_i32, %c0_i32_0 : i32, i32
  }
  func.func @transform_3(%arg0: i32) -> (i32, i32) {
    %c0_i32 = arith.constant 0 : i32
    %c0_i32_0 = arith.constant 0 : i32
    return %arg0, %c0_i32 : i32, i32
  }
}

module attributes {stable_mosaic.version = 11 : i64} {
  func.func @_matmul_bias_act_kernel(%arg0: i32, %arg1: memref<128x72xbf16, #tpu.memory_space<vmem>>, %arg2: memref<72x128xbf16, #tpu.memory_space<vmem>>, %arg3: memref<1x128xf32, #tpu.memory_space<vmem>>, %arg4: memref<128x128xf32, #tpu.memory_space<vmem>>) attributes {dimension_semantics = [#tpu.dimension_semantics<parallel>], iteration_bounds = array<i64: 4>, scalar_prefetch = 0 : i64, scratch_operands = 0 : i64, tpu.core_type = #tpu.core_type<tc>, window_params = [{transform_indices = @transform_0, window_bounds = array<i64: 128, 72>}, {pipeline_mode = #tpu.pipeline_mode<synchronous>, transform_indices = @transform_1, window_bounds = array<i64: 72, 128>}, {pipeline_mode = #tpu.pipeline_mode<synchronous>, transform_indices = @transform_2, window_bounds = array<i64: 1, 128>}, {transform_indices = @transform_3, window_bounds = array<i64: 128, 128>}]} {
    %c0 = arith.constant 0 : index
    %c0_0 = arith.constant 0 : index
    %0 = vector.load %arg1[%c0, %c0_0] : memref<128x72xbf16, #tpu.memory_space<vmem>>, vector<128x72xbf16>
    %c0_1 = arith.constant 0 : index
    %c0_2 = arith.constant 0 : index
    %1 = vector.load %arg2[%c0_1, %c0_2] : memref<72x128xbf16, #tpu.memory_space<vmem>>, vector<72x128xbf16>
    %cst = arith.constant dense<0.000000e+00> : vector<128x128xf32>
    %2 = tpu.matmul %0, %1, %cst {dimension_numbers = #tpu.dot_dimension_numbers<[1], [0], [0], [1], [0, 0, 1, 1], [], []>} : vector<128x72xbf16>, vector<72x128xbf16>, vector<128x128xf32> -> vector<128x128xf32>
    %c0_3 = arith.constant 0 : index
    %c0_4 = arith.constant 0 : index
    %3 = vector.load %arg3[%c0_3, %c0_4] : memref<1x128xf32, #tpu.memory_space<vmem>>, vector<1x128xf32>
    %4 = vector.broadcast %3 : vector<1x128xf32> to vector<128x128xf32>
    %5 = arith.addf %2, %4 : vector<128x128xf32>
    %6 = tpu.iota {dimensions = array<i32: 1>} : vector<128x128xi32>
    %c72_i32 = arith.constant 72 : i32
    %7 = vector.broadcast %c72_i32 : i32 to vector<128x128xi32>
    %8 = arith.cmpi sge, %6, %7 : vector<128x128xi32>
    %9 = arith.negf %5 : vector<128x128xf32>
    %10 = math.exp %9 : vector<128x128xf32>
    %cst_5 = arith.constant 1.000000e+00 : f32
    %11 = vector.broadcast %cst_5 : f32 to vector<128x128xf32>
    %12 = arith.addf %11, %10 : vector<128x128xf32>
    %13 = arith.divf %11, %12 : vector<128x128xf32>
    %14 = arith.select %8, %13, %5 : vector<128x128xi1>, vector<128x128xf32>
    %c0_6 = arith.constant 0 : index
    %c0_7 = arith.constant 0 : index
    %15 = vector.load %arg4[%c0_6, %c0_7] : memref<128x128xf32, #tpu.memory_space<vmem>>, vector<128x128xf32>
    tpu.vector_store %arg4[%c0_6, %c0_7], %14 {strides = array<i32>} : memref<128x128xf32, #tpu.memory_space<vmem>>, vector<128x128xf32>,
    return
  }
  func.func @transform_0(%arg0: i32) -> (i32, i32) {
    %c0_i32 = arith.constant 0 : i32
    %c0_i32_0 = arith.constant 0 : i32
    return %arg0, %c0_i32 : i32, i32
  }
  func.func @transform_1(%arg0: i32) -> (i32, i32) {
    %c0_i32 = arith.constant 0 : i32
    %c0_i32_0 = arith.constant 0 : i32
    %c0_i32_1 = arith.constant 0 : i32
    return %c0_i32, %c0_i32_0 : i32, i32
  }
  func.func @transform_2(%arg0: i32) -> (i32, i32) {
    %c0_i32 = arith.constant 0 : i32
    %c0_i32_0 = arith.constant 0 : i32
    %c0_i32_1 = arith.constant 0 : i32
    return %c0_i32, %c0_i32_0 : i32, i32
  }
  func.func @transform_3(%arg0: i32) -> (i32, i32) {
    %c0_i32 = arith.constant 0 : i32
    %c0_i32_0 = arith.constant 0 : i32
    return %arg0, %c0_i32 : i32, i32
  }
}

module attributes {stable_mosaic.version = 11 : i64} {
  func.func @_matmul_bias_act_kernel(%arg0: i32, %arg1: memref<128x36xbf16, #tpu.memory_space<vmem>>, %arg2: memref<36x128xbf16, #tpu.memory_space<vmem>>, %arg3: memref<1x128xf32, #tpu.memory_space<vmem>>, %arg4: memref<128x128xf32, #tpu.memory_space<vmem>>) attributes {dimension_semantics = [#tpu.dimension_semantics<parallel>], iteration_bounds = array<i64: 4>, scalar_prefetch = 0 : i64, scratch_operands = 0 : i64, tpu.core_type = #tpu.core_type<tc>, window_params = [{transform_indices = @transform_0, window_bounds = array<i64: 128, 36>}, {pipeline_mode = #tpu.pipeline_mode<synchronous>, transform_indices = @transform_1, window_bounds = array<i64: 36, 128>}, {pipeline_mode = #tpu.pipeline_mode<synchronous>, transform_indices = @transform_2, window_bounds = array<i64: 1, 128>}, {transform_indices = @transform_3, window_bounds = array<i64: 128, 128>}]} {
    %c0 = arith.constant 0 : index
    %c0_0 = arith.constant 0 : index
    %0 = vector.load %arg1[%c0, %c0_0] : memref<128x36xbf16, #tpu.memory_space<vmem>>, vector<128x36xbf16>
    %c0_1 = arith.constant 0 : index
    %c0_2 = arith.constant 0 : index
    %1 = vector.load %arg2[%c0_1, %c0_2] : memref<36x128xbf16, #tpu.memory_space<vmem>>, vector<36x128xbf16>
    %cst = arith.constant dense<0.000000e+00> : vector<128x128xf32>
    %2 = tpu.matmul %0, %1, %cst {dimension_numbers = #tpu.dot_dimension_numbers<[1], [0], [0], [1], [0, 0, 1, 1], [], []>} : vector<128x36xbf16>, vector<36x128xbf16>, vector<128x128xf32> -> vector<128x128xf32>
    %c0_3 = arith.constant 0 : index
    %c0_4 = arith.constant 0 : index
    %3 = vector.load %arg3[%c0_3, %c0_4] : memref<1x128xf32, #tpu.memory_space<vmem>>, vector<1x128xf32>
    %4 = vector.broadcast %3 : vector<1x128xf32> to vector<128x128xf32>
    %5 = arith.addf %2, %4 : vector<128x128xf32>
    %cst_5 = arith.constant 0.000000e+00 : f32
    %6 = vector.broadcast %cst_5 : f32 to vector<128x128xf32>
    %7 = arith.maximumf %5, %6 : vector<128x128xf32>
    %c0_6 = arith.constant 0 : index
    %c0_7 = arith.constant 0 : index
    %8 = vector.load %arg4[%c0_6, %c0_7] : memref<128x128xf32, #tpu.memory_space<vmem>>, vector<128x128xf32>
    tpu.vector_store %arg4[%c0_6, %c0_7], %7 {strides = array<i32>} : memref<128x128xf32, #tpu.memory_space<vmem>>, vector<128x128xf32>,
    return
  }
  func.func @transform_0(%arg0: i32) -> (i32, i32) {
    %c0_i32 = arith.constant 0 : i32
    %c0_i32_0 = arith.constant 0 : i32
    return %arg0, %c0_i32 : i32, i32
  }
  func.func @transform_1(%arg0: i32) -> (i32, i32) {
    %c0_i32 = arith.constant 0 : i32
    %c0_i32_0 = arith.constant 0 : i32
    %c0_i32_1 = arith.constant 0 : i32
    return %c0_i32, %c0_i32_0 : i32, i32
  }
  func.func @transform_2(%arg0: i32) -> (i32, i32) {
    %c0_i32 = arith.constant 0 : i32
    %c0_i32_0 = arith.constant 0 : i32
    %c0_i32_1 = arith.constant 0 : i32
    return %c0_i32, %c0_i32_0 : i32, i32
  }
  func.func @transform_3(%arg0: i32) -> (i32, i32) {
    %c0_i32 = arith.constant 0 : i32
    %c0_i32_0 = arith.constant 0 : i32
    return %arg0, %c0_i32 : i32, i32
  }
}

</mosaic_0001>

<bundles_post_ra>
// kernel: stff_forward.4
= control target key start
LH: loop header
LB: loop body
LE: loop exit
PB: predicated region body
PF: predicated region fallthrough
CT: control target
= control target key end

     0   :  { %s631_s12 = smov 0   ;;  %s703_s0 = inlined_call_operand.vmem [shape: bf16[512,36], index: 0, kind: input, shape index: {}]   ;;  %s704_s1 = inlined_call_operand.vmem [shape: bf16[36,128], index: 1, kind: input, shape index: {}]   ;;  %s705_s2 = inlined_call_operand.vmem [shape: f32[1,128], index: 2, kind: input, shape index: {}]   ;;  %s706_s3 = inlined_call_operand.vmem [shape: bf16[512,128], index: 3, kind: output, shape index: {}]  }
   0x1 LB: > { %s469_s13 = sadd.s32 4294967295, %s609_s12   ;;  %p473_p0 = scmp.ge.s32.totalorder %s609_s12, 1  ;;  %s609_s12 = sphi %s631_s12, %s13_s12  }
   0x2   : > { %p138_p1 = scmp.lt.s32.totalorder %s609_s12, 5 }
   0x4   : > { %p139_p2 = pnand %p473_p0, %p138_p1 }
   0x5   : > { %s474_s16 = sshll.u32 (!%p139_p2), %s469_s13, 4 }
   0x6   : > { %142 = sbr.rel (%p139_p2) target bundleno = 194 (0xc2), region = 32  ;;  %p163_p3 = scmp.lt.s32.totalorder (!%p139_p2), %s474_s16, 63 }
   0xb   : > { %v195_v0 = vld [vmem:[%s704_s1 + $0x10] sm:$0x3]  ;;  %vm280_vm0 = vcmask 1041408   ;;  %s708_s16 = smov (!%p163_p3, %s474_s16), 63  ;;  %v537_v4 = vld [vmem:[%s704_s1 + $0x8] sm:$0xff]  ;;  %v536_v5 = vld [vmem:[%s704_s1] sm:$0xff] }
   0xc   : > { %v249_v1 = vunpack.c.l.b16 %v195_v0  ;;  %s475_s19 = sshll.u32 %s708_s16, 2  ;;  %vm255_vm1 = vcmask 293888   ;;  %v667_v16 = vld [vmem:[%s705_s2] ss:$0 sm:$0xff] }
   0xd   : > { %s166_s24 = scalar_lea.vmem %s703_s0, %s475_s19  ;;  %s680_s29 = scalar_lea.vmem %s706_s3, %s475_s19 }
   0xe   : > { %v252_v2 = vpack.c.b16 %v249_v1, %v249_v1  ;;  %v528_v6 = vld [vmem:[%s166_s24] sm:$0xff]  ;;  %v530_v7 = vld [vmem:[%s166_s24 + $0x10] sm:$0xff]  ;;  %v529_v10 = vld [vmem:[%s166_s24 + $0x8] sm:$0xff] }
   0xf   : > { %v532_v8 = vld [vmem:[%s166_s24 + $0x20] sm:$0xff]  ;;  %v534_v9 = vld [vmem:[%s166_s24 + $0x30] sm:$0xff]  ;;  %v531_v11 = vld [vmem:[%s166_s24 + $0x18] sm:$0xff] }
  0x10   : > { %v282_v3 = vsel %vm280_vm0, %v252_v2, 0  ;;  %v533_v12 = vld [vmem:[%s166_s24 + $0x28] sm:$0xff]  ;;  %v535_v13 = vld [vmem:[%s166_s24 + $0x38] sm:$0xff] }
  0x11   : > { %289 = vmatpush.bf16.msra.mxu0 %v282_v3  ;;  %585 = vmatpush.bf16.msra.mxu1 %v282_v3 }
  0x12   : > { %586 = vmatpush.bf16.msra.mxu2 %v282_v3  ;;  %587 = vmatpush.bf16.msra.mxu3 %v282_v3 }
  0x15   : > { %290 = vmatpush.bf16.msra.mxu0 %v537_v4  ;;  %588 = vmatpush.bf16.msra.mxu1 %v537_v4 }
  0x16   : > { %589 = vmatpush.bf16.msra.mxu2 %v537_v4  ;;  %590 = vmatpush.bf16.msra.mxu3 %v537_v4 }
  0x19   : > { %291 = vmatpush.bf16.msra.mxu0 %v536_v5  ;;  %591 = vmatpush.bf16.msra.mxu1 %v536_v5 }
  0x1a   : > { %592 = vmatpush.bf16.msra.mxu2 %v536_v5  ;;  %593 = vmatpush.bf16.msra.mxu3 %v536_v5 }
  0x1c   : > { %518 = vmatmul.msk.bf16.vlgmr.msra.gmra.mxu0 %vm255_vm1, %v528_v6  ;;  %520 = vmatmul.msk.bf16.vlgmr.msra.gmra.mxu1 %vm255_vm1, %v530_v7 }
  0x1d   : > { %522 = vmatmul.msk.bf16.vlgmr.msra.gmra.mxu2 %vm255_vm1, %v532_v8  ;;  %524 = vmatmul.msk.bf16.vlgmr.msra.gmra.mxu3 %vm255_vm1, %v534_v9 }
  0x2c   : > { %519 = vmatmul.msk.bf16.gmra.mxu0 %vm255_vm1, %v529_v10  ;;  %521 = vmatmul.msk.bf16.gmra.mxu1 %vm255_vm1, %v531_v11 }
  0x2d   : > { %523 = vmatmul.msk.bf16.gmra.mxu2 %vm255_vm1, %v533_v12  ;;  %525 = vmatmul.msk.bf16.gmra.mxu3 %vm255_vm1, %v535_v13 }
  0x99   : > { %v293_v14 = vpop.f32.mrf.mxu0  ;;  %v303_v15 = vpop.f32.mrf.mxu1 }
  0x9a   : > { %v294_v17 = vadd.f32 %v667_v16, %v293_v14  ;;  %v304_v18 = vadd.f32 %v667_v16, %v303_v15 }
  0x9c   : > { %v349_v23 = vmul.f32 0.1, %v294_v17  ;;  %v353_v24 = vmul.f32 0.1, %v304_v18  ;;  %vm333_vm2 = vcmp.ge.f32.partialorder %v294_v17, 0.0  ;;  %vm337_vm3 = vcmp.ge.f32.partialorder %v304_v18, 0.0 }
  0x9e   : > { %v365_v31 = vsel %vm333_vm2, %v294_v17, %v349_v23  ;;  %v369_v32 = vsel %vm337_vm3, %v304_v18, %v353_v24 }
  0xa0   : > { %v313_v19 = vpop.f32.mrf.mxu2  ;;  %v323_v20 = vpop.f32.mrf.mxu3 }
  0xa1   : > { %v295_v21 = vpop.f32.mrf.mxu0  ;;  %v305_v22 = vpop.f32.mrf.mxu1  ;;  %v314_v29 = vadd.f32 %v667_v16, %v313_v19  ;;  %v324_v30 = vadd.f32 %v667_v16, %v323_v20 }
  0xa2   : > { %v296_v25 = vadd.f32 %v667_v16, %v295_v21  ;;  %v306_v26 = vadd.f32 %v667_v16, %v305_v22 }
  0xa3   : > { %v357_v39 = vmul.f32 0.1, %v314_v29  ;;  %v361_v40 = vmul.f32 0.1, %v324_v30  ;;  %vm341_vm6 = vcmp.ge.f32.partialorder %v314_v29, 0.0  ;;  %vm345_vm7 = vcmp.ge.f32.partialorder %v324_v30, 0.0 }
  0xa4   : > { %vm334_vm4 = vcmp.ge.f32.partialorder %v296_v25, 0.0  ;;  %v350_v27 = vmul.f32 0.1, %v296_v25  ;;  %vm338_vm5 = vcmp.ge.f32.partialorder %v306_v26, 0.0  ;;  %v354_v28 = vmul.f32 0.1, %v306_v26 }
  0xa5   : > { %v373_v47 = vsel %vm341_vm6, %v314_v29, %v357_v39  ;;  %v377_v48 = vsel %vm345_vm7, %v324_v30, %v361_v40 }
  0xa6   : > { %v366_v33 = vsel %vm334_vm4, %v296_v25, %v350_v27  ;;  %v370_v34 = vsel %vm338_vm5, %v306_v26, %v354_v28 }
  0xa7   : > { %v541_v35 = vpack.c.bf16 %v366_v33, %v365_v31  ;;  %v551_v36 = vpack.c.bf16 %v370_v34, %v369_v32 }
  0xa8   : > { %v315_v37 = vpop.f32.mrf.mxu2  ;;  %v325_v38 = vpop.f32.mrf.mxu3 }
  0xa9   : > { %542 = vst [vmem:[%s680_s29] sm:$0xff] %v541_v35   ;;  %v316_v41 = vadd.f32 %v667_v16, %v315_v37  ;;  %v326_v42 = vadd.f32 %v667_v16, %v325_v38  ;;  %v298_v43 = vpop.f32.mrf.mxu0  ;;  %v308_v44 = vpop.f32.mrf.mxu1 }
  0xaa   : > { %579 = vst [vmem:[%s680_s29 + $0x10] sm:$0xff] %v551_v36   ;;  %v299_v53 = vadd.f32 %v667_v16, %v298_v43  ;;  %v309_v54 = vadd.f32 %v667_v16, %v308_v44 }
  0xab   : > { %vm342_vm8 = vcmp.ge.f32.partialorder %v316_v41, 0.0  ;;  %v358_v45 = vmul.f32 0.1, %v316_v41  ;;  %vm346_vm9 = vcmp.ge.f32.partialorder %v326_v42, 0.0  ;;  %v362_v46 = vmul.f32 0.1, %v326_v42 }
  0xac   : > { %v351_v59 = vmul.f32 0.1, %v299_v53  ;;  %v355_v60 = vmul.f32 0.1, %v309_v54  ;;  %vm335_vm10 = vcmp.ge.f32.partialorder %v299_v53, 0.0  ;;  %vm339_vm11 = vcmp.ge.f32.partialorder %v309_v54, 0.0 }
  0xad   : > { %v374_v49 = vsel %vm342_vm8, %v316_v41, %v358_v45  ;;  %v378_v50 = vsel %vm346_vm9, %v326_v42, %v362_v46 }
  0xae   : > { %v561_v51 = vpack.c.bf16 %v374_v49, %v373_v47  ;;  %v571_v52 = vpack.c.bf16 %v378_v50, %v377_v48  ;;  %v367_v3 = vsel %vm335_vm10, %v299_v53, %v351_v59  ;;  %v371_v4 = vsel %vm339_vm11, %v309_v54, %v355_v60 }
  0xb0   : > { %581 = vst [vmem:[%s680_s29 + $0x20] sm:$0xff] %v561_v51   ;;  %v318_v55 = vpop.f32.mrf.mxu2  ;;  %v328_v56 = vpop.f32.mrf.mxu3 }
  0xb1   : > { %583 = vst [vmem:[%s680_s29 + $0x30] sm:$0xff] %v571_v52   ;;  %v300_v57 = vpop.f32.mrf.mxu0  ;;  %v310_v58 = vpop.f32.mrf.mxu1  ;;  %v319_v1 = vadd.f32 %v667_v16, %v318_v55  ;;  %v329_v2 = vadd.f32 %v667_v16, %v328_v56 }
  0xb2   : > { %v301_v61 = vadd.f32 %v667_v16, %v300_v57  ;;  %v311_v62 = vadd.f32 %v667_v16, %v310_v58 }
  0xb3   : > { %v359_v11 = vmul.f32 0.1, %v319_v1  ;;  %v363_v12 = vmul.f32 0.1, %v329_v2  ;;  %vm343_vm14 = vcmp.ge.f32.partialorder %v319_v1, 0.0  ;;  %vm347_vm15 = vcmp.ge.f32.partialorder %v329_v2, 0.0 }
  0xb4   : > { %vm336_vm12 = vcmp.ge.f32.partialorder %v301_v61, 0.0  ;;  %v352_v63 = vmul.f32 0.1, %v301_v61  ;;  %vm340_vm13 = vcmp.ge.f32.partialorder %v311_v62, 0.0  ;;  %v356_v0 = vmul.f32 0.1, %v311_v62 }
  0xb5   : > { %v375_v18 = vsel %vm343_vm14, %v319_v1, %v359_v11  ;;  %v379_v19 = vsel %vm347_vm15, %v329_v2, %v363_v12 }
  0xb6   : > { %v368_v5 = vsel %vm336_vm12, %v301_v61, %v352_v63  ;;  %v372_v6 = vsel %vm340_vm13, %v311_v62, %v356_v0 }
  0xb7   : > { %v546_v7 = vpack.c.bf16 %v368_v5, %v367_v3  ;;  %v556_v8 = vpack.c.bf16 %v372_v6, %v371_v4 }
  0xb8   : > { %v320_v9 = vpop.f32.mrf.mxu2  ;;  %v330_v10 = vpop.f32.mrf.mxu3 }
  0xb9   : > { %578 = vst [vmem:[%s680_s29 + $0x8] sm:$0xff] %v546_v7   ;;  %v321_v13 = vadd.f32 %v667_v16, %v320_v9  ;;  %v331_v14 = vadd.f32 %v667_v16, %v330_v10 }
  0xba   : > { %580 = vst [vmem:[%s680_s29 + $0x18] sm:$0xff] %v556_v8  }
  0xbb   : > { %vm344_vm0 = vcmp.ge.f32.partialorder %v321_v13, 0.0  ;;  %v360_v15 = vmul.f32 0.1, %v321_v13  ;;  %vm348_vm1 = vcmp.ge.f32.partialorder %v331_v14, 0.0  ;;  %v364_v17 = vmul.f32 0.1, %v331_v14 }
  0xbd   : > { %v376_v20 = vsel %vm344_vm0, %v321_v13, %v360_v15  ;;  %v380_v21 = vsel %vm348_vm1, %v331_v14, %v364_v17 }
  0xbe   : > { %v566_v22 = vpack.c.bf16 %v376_v20, %v375_v18  ;;  %v576_v23 = vpack.c.bf16 %v380_v21, %v379_v19 }
  0xc0   : > { %582 = vst [vmem:[%s680_s29 + $0x28] sm:$0xff] %v566_v22  }
  0xc1   : > { %584 = vst [vmem:[%s680_s29 + $0x38] sm:$0xff] %v576_v23  }
  0xc2 PF: > { %s13_s12 = sadd.s32 1, %s609_s12  }
  0xc3   : > { %p10_p4 = scmp.ge.s32.totalorder %s13_s12, 6  }
  0xc5   :  { %12 = sbr.rel (!%p10_p4) target bundleno = 1 (0x1), region = 62 }

// kernel: stff_forward.5
= control target key start
LH: loop header
LB: loop body
LE: loop exit
PB: predicated region body
PF: predicated region fallthrough
CT: control target
= control target key end

     0   :  { %s663_s12 = smov 0   ;;  %s741_s0 = inlined_call_operand.vmem [shape: bf16[512,72], index: 0, kind: input, shape index: {}]   ;;  %s742_s1 = inlined_call_operand.vmem [shape: bf16[72,128], index: 1, kind: input, shape index: {}]   ;;  %s743_s2 = inlined_call_operand.vmem [shape: f32[1,128], index: 2, kind: input, shape index: {}]   ;;  %s744_s3 = inlined_call_operand.vmem [shape: bf16[512,128], index: 3, kind: output, shape index: {}]  }
   0x1 LB: > { %s485_s13 = sadd.s32 4294967295, %s641_s12   ;;  %p489_p0 = scmp.ge.s32.totalorder %s641_s12, 1  ;;  %s641_s12 = sphi %s663_s12, %s13_s12  }
   0x2   : > { %p138_p1 = scmp.lt.s32.totalorder %s641_s12, 5 }
   0x4   : > { %p139_p2 = pnand %p489_p0, %p138_p1 }
   0x5   : > { %s490_s16 = sshll.u32 (!%p139_p2), %s485_s13, 4 }
   0x6   : > { %142 = sbr.rel (%p139_p2) target bundleno = 202 (0xca), region = 32  ;;  %p163_p3 = scmp.lt.s32.totalorder (!%p139_p2), %s490_s16, 63 }
   0xb   : > { %v199_v0 = vld [vmem:[%s742_s1 + $0x20] sm:$0xf]  ;;  %vm296_vm0 = vcmask 1043456   ;;  %v563_v4 = vld [vmem:[%s742_s1 + $0x18] sm:$0xff]  ;;  %v562_v5 = vld [vmem:[%s742_s1 + $0x10] sm:$0xff]  ;;  %s746_s16 = smov (!%p163_p3, %s490_s16), 63 }
   0xc   : > { %v261_v1 = vunpack.c.l.b16 %v199_v0  ;;  %v561_v6 = vld [vmem:[%s742_s1 + $0x8] sm:$0xff]  ;;  %s491_s23 = sshll.u32 %s746_s16, 2  ;;  %v560_v7 = vld [vmem:[%s742_s1] sm:$0xff]  ;;  %vm271_vm1 = vcmask 588800  }
   0xd   : > { %s166_s28 = scalar_lea.vmem %s741_s0, %s491_s23  ;;  %v705_v18 = vld [vmem:[%s743_s2] ss:$0 sm:$0xff]  ;;  %s718_s6 = scalar_lea.vmem %s744_s3, %s491_s23 }
   0xe   : > { %v266_v2 = vpack.c.b16 %v261_v1, %v261_v1  ;;  %v552_v8 = vld [vmem:[%s166_s28] sm:$0xff]  ;;  %v554_v9 = vld [vmem:[%s166_s28 + $0x10] sm:$0xff]  ;;  %v553_v12 = vld [vmem:[%s166_s28 + $0x8] sm:$0xff] }
   0xf   : > { %v556_v10 = vld [vmem:[%s166_s28 + $0x20] sm:$0xff]  ;;  %v558_v11 = vld [vmem:[%s166_s28 + $0x30] sm:$0xff]  ;;  %v555_v13 = vld [vmem:[%s166_s28 + $0x18] sm:$0xff] }
  0x10   : > { %v298_v3 = vsel %vm296_vm0, %v266_v2, 0  ;;  %v557_v14 = vld [vmem:[%s166_s28 + $0x28] sm:$0xff]  ;;  %v559_v15 = vld [vmem:[%s166_s28 + $0x38] sm:$0xff] }
  0x11   : > { %303 = vmatpush.bf16.msra.mxu0 %v298_v3  ;;  %611 = vmatpush.bf16.msra.mxu1 %v298_v3 }
  0x12   : > { %612 = vmatpush.bf16.msra.mxu2 %v298_v3  ;;  %613 = vmatpush.bf16.msra.mxu3 %v298_v3 }
  0x15   : > { %304 = vmatpush.bf16.msra.mxu0 %v563_v4  ;;  %614 = vmatpush.bf16.msra.mxu1 %v563_v4 }
  0x16   : > { %615 = vmatpush.bf16.msra.mxu2 %v563_v4  ;;  %616 = vmatpush.bf16.msra.mxu3 %v563_v4 }
  0x19   : > { %305 = vmatpush.bf16.msra.mxu0 %v562_v5  ;;  %617 = vmatpush.bf16.msra.mxu1 %v562_v5 }
  0x1a   : > { %618 = vmatpush.bf16.msra.mxu2 %v562_v5  ;;  %619 = vmatpush.bf16.msra.mxu3 %v562_v5 }
  0x1d   : > { %306 = vmatpush.bf16.msra.mxu0 %v561_v6  ;;  %620 = vmatpush.bf16.msra.mxu1 %v561_v6 }
  0x1e   : > { %621 = vmatpush.bf16.msra.mxu2 %v561_v6  ;;  %622 = vmatpush.bf16.msra.mxu3 %v561_v6 }
  0x21   : > { %307 = vmatpush.bf16.msra.mxu0 %v560_v7  ;;  %623 = vmatpush.bf16.msra.mxu1 %v560_v7 }
  0x22   : > { %624 = vmatpush.bf16.msra.mxu2 %v560_v7  ;;  %625 = vmatpush.bf16.msra.mxu3 %v560_v7 }
  0x24   : > { %542 = vmatmul.msk.bf16.vlgmr.msra.gmra.mxu0 %vm271_vm1, %v552_v8  ;;  %544 = vmatmul.msk.bf16.vlgmr.msra.gmra.mxu1 %vm271_vm1, %v554_v9 }
  0x25   : > { %546 = vmatmul.msk.bf16.vlgmr.msra.gmra.mxu2 %vm271_vm1, %v556_v10  ;;  %548 = vmatmul.msk.bf16.vlgmr.msra.gmra.mxu3 %vm271_vm1, %v558_v11 }
  0x34   : > { %543 = vmatmul.msk.bf16.gmra.mxu0 %vm271_vm1, %v553_v12  ;;  %545 = vmatmul.msk.bf16.gmra.mxu1 %vm271_vm1, %v555_v13 }
  0x35   : > { %547 = vmatmul.msk.bf16.gmra.mxu2 %vm271_vm1, %v557_v14  ;;  %549 = vmatmul.msk.bf16.gmra.mxu3 %vm271_vm1, %v559_v15 }
  0xa1   : > { %v309_v16 = vpop.f32.mrf.mxu0  ;;  %v319_v17 = vpop.f32.mrf.mxu1 }
  0xa2   : > { %v310_v19 = vadd.f32 %v705_v18, %v309_v16  ;;  %v320_v20 = vadd.f32 %v705_v18, %v319_v17 }
  0xa4   : > { %v365_v25 = vmul.f32 0.1, %v310_v19  ;;  %v369_v26 = vmul.f32 0.1, %v320_v20  ;;  %vm349_vm2 = vcmp.ge.f32.partialorder %v310_v19, 0.0  ;;  %vm353_vm3 = vcmp.ge.f32.partialorder %v320_v20, 0.0 }
  0xa6   : > { %v381_v33 = vsel %vm349_vm2, %v310_v19, %v365_v25  ;;  %v385_v34 = vsel %vm353_vm3, %v320_v20, %v369_v26 }
  0xa8   : > { %v329_v21 = vpop.f32.mrf.mxu2  ;;  %v339_v22 = vpop.f32.mrf.mxu3 }
  0xa9   : > { %v311_v23 = vpop.f32.mrf.mxu0  ;;  %v321_v24 = vpop.f32.mrf.mxu1  ;;  %v330_v31 = vadd.f32 %v705_v18, %v329_v21  ;;  %v340_v32 = vadd.f32 %v705_v18, %v339_v22 }
  0xaa   : > { %v312_v27 = vadd.f32 %v705_v18, %v311_v23  ;;  %v322_v28 = vadd.f32 %v705_v18, %v321_v24 }
  0xab   : > { %v373_v41 = vmul.f32 0.1, %v330_v31  ;;  %v377_v42 = vmul.f32 0.1, %v340_v32  ;;  %vm357_vm6 = vcmp.ge.f32.partialorder %v330_v31, 0.0  ;;  %vm361_vm7 = vcmp.ge.f32.partialorder %v340_v32, 0.0 }
  0xac   : > { %vm350_vm4 = vcmp.ge.f32.partialorder %v312_v27, 0.0  ;;  %v366_v29 = vmul.f32 0.1, %v312_v27  ;;  %vm354_vm5 = vcmp.ge.f32.partialorder %v322_v28, 0.0  ;;  %v370_v30 = vmul.f32 0.1, %v322_v28 }
  0xad   : > { %v389_v49 = vsel %vm357_vm6, %v330_v31, %v373_v41  ;;  %v393_v50 = vsel %vm361_vm7, %v340_v32, %v377_v42 }
  0xae   : > { %v382_v35 = vsel %vm350_vm4, %v312_v27, %v366_v29  ;;  %v386_v36 = vsel %vm354_vm5, %v322_v28, %v370_v30 }
  0xaf   : > { %v567_v37 = vpack.c.bf16 %v382_v35, %v381_v33  ;;  %v577_v38 = vpack.c.bf16 %v386_v36, %v385_v34 }
  0xb0   : > { %v331_v39 = vpop.f32.mrf.mxu2  ;;  %v341_v40 = vpop.f32.mrf.mxu3 }
  0xb1   : > { %568 = vst [vmem:[%s718_s6] sm:$0xff] %v567_v37   ;;  %v332_v43 = vadd.f32 %v705_v18, %v331_v39  ;;  %v342_v44 = vadd.f32 %v705_v18, %v341_v40  ;;  %v314_v45 = vpop.f32.mrf.mxu0  ;;  %v324_v46 = vpop.f32.mrf.mxu1 }
  0xb2   : > { %605 = vst [vmem:[%s718_s6 + $0x10] sm:$0xff] %v577_v38   ;;  %v315_v55 = vadd.f32 %v705_v18, %v314_v45  ;;  %v325_v56 = vadd.f32 %v705_v18, %v324_v46 }
  0xb3   : > { %vm358_vm8 = vcmp.ge.f32.partialorder %v332_v43, 0.0  ;;  %v374_v47 = vmul.f32 0.1, %v332_v43  ;;  %vm362_vm9 = vcmp.ge.f32.partialorder %v342_v44, 0.0  ;;  %v378_v48 = vmul.f32 0.1, %v342_v44 }
  0xb4   : > { %v367_v61 = vmul.f32 0.1, %v315_v55  ;;  %v371_v62 = vmul.f32 0.1, %v325_v56  ;;  %vm351_vm10 = vcmp.ge.f32.partialorder %v315_v55, 0.0  ;;  %vm355_vm11 = vcmp.ge.f32.partialorder %v325_v56, 0.0 }
  0xb5   : > { %v390_v51 = vsel %vm358_vm8, %v332_v43, %v374_v47  ;;  %v394_v52 = vsel %vm362_vm9, %v342_v44, %v378_v48 }
  0xb6   : > { %v587_v53 = vpack.c.bf16 %v390_v51, %v389_v49  ;;  %v597_v54 = vpack.c.bf16 %v394_v52, %v393_v50  ;;  %v383_v5 = vsel %vm351_vm10, %v315_v55, %v367_v61  ;;  %v387_v6 = vsel %vm355_vm11, %v325_v56, %v371_v62 }
  0xb8   : > { %607 = vst [vmem:[%s718_s6 + $0x20] sm:$0xff] %v587_v53   ;;  %v334_v57 = vpop.f32.mrf.mxu2  ;;  %v344_v58 = vpop.f32.mrf.mxu3 }
  0xb9   : > { %609 = vst [vmem:[%s718_s6 + $0x30] sm:$0xff] %v597_v54   ;;  %v316_v59 = vpop.f32.mrf.mxu0  ;;  %v326_v60 = vpop.f32.mrf.mxu1  ;;  %v335_v3 = vadd.f32 %v705_v18, %v334_v57  ;;  %v345_v4 = vadd.f32 %v705_v18, %v344_v58 }
  0xba   : > { %v317_v63 = vadd.f32 %v705_v18, %v316_v59  ;;  %v327_v0 = vadd.f32 %v705_v18, %v326_v60 }
  0xbb   : > { %v375_v13 = vmul.f32 0.1, %v335_v3  ;;  %v379_v14 = vmul.f32 0.1, %v345_v4  ;;  %vm359_vm14 = vcmp.ge.f32.partialorder %v335_v3, 0.0  ;;  %vm363_vm15 = vcmp.ge.f32.partialorder %v345_v4, 0.0 }
  0xbc   : > { %vm352_vm12 = vcmp.ge.f32.partialorder %v317_v63, 0.0  ;;  %v368_v1 = vmul.f32 0.1, %v317_v63  ;;  %vm356_vm13 = vcmp.ge.f32.partialorder %v327_v0, 0.0  ;;  %v372_v2 = vmul.f32 0.1, %v327_v0 }
  0xbd   : > { %v391_v20 = vsel %vm359_vm14, %v335_v3, %v375_v13  ;;  %v395_v21 = vsel %vm363_vm15, %v345_v4, %v379_v14 }
  0xbe   : > { %v384_v7 = vsel %vm352_vm12, %v317_v63, %v368_v1  ;;  %v388_v8 = vsel %vm356_vm13, %v327_v0, %v372_v2 }
  0xbf   : > { %v572_v9 = vpack.c.bf16 %v384_v7, %v383_v5  ;;  %v582_v10 = vpack.c.bf16 %v388_v8, %v387_v6 }
  0xc0   : > { %v336_v11 = vpop.f32.mrf.mxu2  ;;  %v346_v12 = vpop.f32.mrf.mxu3 }
  0xc1   : > { %604 = vst [vmem:[%s718_s6 + $0x8] sm:$0xff] %v572_v9   ;;  %v337_v15 = vadd.f32 %v705_v18, %v336_v11  ;;  %v347_v16 = vadd.f32 %v705_v18, %v346_v12 }
  0xc2   : > { %606 = vst [vmem:[%s718_s6 + $0x18] sm:$0xff] %v582_v10  }
  0xc3   : > { %vm360_vm0 = vcmp.ge.f32.partialorder %v337_v15, 0.0  ;;  %v376_v17 = vmul.f32 0.1, %v337_v15  ;;  %vm364_vm1 = vcmp.ge.f32.partialorder %v347_v16, 0.0  ;;  %v380_v19 = vmul.f32 0.1, %v347_v16 }
  0xc5   : > { %v392_v22 = vsel %vm360_vm0, %v337_v15, %v376_v17  ;;  %v396_v23 = vsel %vm364_vm1, %v347_v16, %v380_v19 }
  0xc6   : > { %v592_v24 = vpack.c.bf16 %v392_v22, %v391_v20  ;;  %v602_v25 = vpack.c.bf16 %v396_v23, %v395_v21 }
  0xc8   : > { %608 = vst [vmem:[%s718_s6 + $0x28] sm:$0xff] %v592_v24  }
  0xc9   : > { %610 = vst [vmem:[%s718_s6 + $0x38] sm:$0xff] %v602_v25  }
  0xca PF: > { %s13_s12 = sadd.s32 1, %s641_s12  }
  0xcb   : > { %p10_p4 = scmp.ge.s32.totalorder %s13_s12, 6  }
  0xcd   :  { %12 = sbr.rel (!%p10_p4) target bundleno = 1 (0x1), region = 62 }

// kernel: stff_forward.6
= control target key start
LH: loop header
LB: loop body
LE: loop exit
PB: predicated region body
PF: predicated region fallthrough
CT: control target
= control target key end

     0   :  { %s955_s12 = smov 0   ;;  %s1329_s0 = inlined_call_operand.vmem [shape: bf16[512,72], index: 0, kind: input, shape index: {}]   ;;  %s1330_s1 = inlined_call_operand.vmem [shape: bf16[72,128], index: 1, kind: input, shape index: {}]   ;;  %s1331_s2 = inlined_call_operand.vmem [shape: f32[1,128], index: 2, kind: input, shape index: {}]   ;;  %s1332_s3 = inlined_call_operand.vmem [shape: f32[512,128], index: 3, kind: output, shape index: {}]  }
   0x1 LB: > { %s744_s13 = sadd.s32 4294967295, %s933_s12   ;;  %p748_p0 = scmp.ge.s32.totalorder %s933_s12, 1  ;;  %s933_s12 = sphi %s955_s12, %s13_s12  }
   0x2   : > { %p138_p1 = scmp.lt.s32.totalorder %s933_s12, 5 }
   0x4   : > { %p139_p2 = pnand %p748_p0, %p138_p1 }
   0x5   : > { %s749_s16 = sshll.u32 (!%p139_p2), %s744_s13, 4 }
   0x6   : > { %142 = sbr.rel (%p139_p2) target bundleno = 249 (0xf9), region = 32  ;;  %p163_p3 = scmp.lt.s32.totalorder (!%p139_p2), %s749_s16, 63 }
   0xb   : > { %v199_v0 = vld [vmem:[%s1330_s1 + $0x20] sm:$0xf]  ;;  %vm296_vm0 = vcmask 1043456   ;;  %v838_v4 = vld [vmem:[%s1330_s1 + $0x18] sm:$0xff]  ;;  %v837_v5 = vld [vmem:[%s1330_s1 + $0x10] sm:$0xff]  ;;  %s1352_s16 = smov (!%p163_p3, %s749_s16), 63  ;;  %v349_v35 = vlaneseq }
   0xc   : > { %v261_v1 = vunpack.c.l.b16 %v199_v0  ;;  %v836_v6 = vld [vmem:[%s1330_s1 + $0x8] sm:$0xff]  ;;  %s750_s23 = sshll.u32 %s1352_s16, 2  ;;  %v835_v7 = vld [vmem:[%s1330_s1] sm:$0xff]  ;;  %vm271_vm1 = vcmask 588800   ;;  %s752_s4 = sshll.u32 %s1352_s16, 3 }
   0xd   : > { %s166_s28 = scalar_lea.vmem %s1329_s0, %s750_s23  ;;  %v995_v16 = vld [vmem:[%s1331_s2] ss:$0 sm:$0xff]  ;;  %v1027_v42 = vand.u32 127, %v349_v35  ;;  %s1093_s7 = scalar_lea.vmem %s1332_s3, %s752_s4 }
   0xe   : > { %v266_v2 = vpack.c.b16 %v261_v1, %v261_v1  ;;  %v827_v8 = vld [vmem:[%s166_s28] sm:$0xff]  ;;  %v829_v9 = vld [vmem:[%s166_s28 + $0x10] sm:$0xff]  ;;  %v828_v12 = vld [vmem:[%s166_s28 + $0x8] sm:$0xff] }
   0xf   : > { %v831_v10 = vld [vmem:[%s166_s28 + $0x20] sm:$0xff]  ;;  %v833_v11 = vld [vmem:[%s166_s28 + $0x30] sm:$0xff]  ;;  %v830_v13 = vld [vmem:[%s166_s28 + $0x18] sm:$0xff]  ;;  %vm351_vm2 = vcmp.ge.s32.totalorder %v1027_v42, 72 }
  0x10   : > { %v298_v3 = vsel %vm296_vm0, %v266_v2, 0  ;;  %v832_v14 = vld [vmem:[%s166_s28 + $0x28] sm:$0xff]  ;;  %v834_v15 = vld [vmem:[%s166_s28 + $0x38] sm:$0xff] }
  0x11   : > { %303 = vmatpush.bf16.msra.mxu0 %v298_v3  ;;  %839 = vmatpush.bf16.msra.mxu1 %v298_v3 }
  0x12   : > { %840 = vmatpush.bf16.msra.mxu2 %v298_v3  ;;  %841 = vmatpush.bf16.msra.mxu3 %v298_v3 }
  0x15   : > { %304 = vmatpush.bf16.msra.mxu0 %v838_v4  ;;  %842 = vmatpush.bf16.msra.mxu1 %v838_v4 }
  0x16   : > { %843 = vmatpush.bf16.msra.mxu2 %v838_v4  ;;  %844 = vmatpush.bf16.msra.mxu3 %v838_v4 }
  0x19   : > { %305 = vmatpush.bf16.msra.mxu0 %v837_v5  ;;  %845 = vmatpush.bf16.msra.mxu1 %v837_v5 }
  0x1a   : > { %846 = vmatpush.bf16.msra.mxu2 %v837_v5  ;;  %847 = vmatpush.bf16.msra.mxu3 %v837_v5 }
  0x1d   : > { %306 = vmatpush.bf16.msra.mxu0 %v836_v6  ;;  %848 = vmatpush.bf16.msra.mxu1 %v836_v6 }
  0x1e   : > { %849 = vmatpush.bf16.msra.mxu2 %v836_v6  ;;  %850 = vmatpush.bf16.msra.mxu3 %v836_v6 }
  0x21   : > { %307 = vmatpush.bf16.msra.mxu0 %v835_v7  ;;  %851 = vmatpush.bf16.msra.mxu1 %v835_v7 }
  0x22   : > { %852 = vmatpush.bf16.msra.mxu2 %v835_v7  ;;  %853 = vmatpush.bf16.msra.mxu3 %v835_v7 }
  0x24   : > { %801 = vmatmul.msk.bf16.vlgmr.msra.gmra.mxu0 %vm271_vm1, %v827_v8  ;;  %803 = vmatmul.msk.bf16.vlgmr.msra.gmra.mxu1 %vm271_vm1, %v829_v9 }
  0x25   : > { %805 = vmatmul.msk.bf16.vlgmr.msra.gmra.mxu2 %vm271_vm1, %v831_v10  ;;  %807 = vmatmul.msk.bf16.vlgmr.msra.gmra.mxu3 %vm271_vm1, %v833_v11 }
  0x34   : > { %802 = vmatmul.msk.bf16.gmra.mxu0 %vm271_vm1, %v828_v12  ;;  %804 = vmatmul.msk.bf16.gmra.mxu1 %vm271_vm1, %v830_v13 }
  0x35   : > { %806 = vmatmul.msk.bf16.gmra.mxu2 %vm271_vm1, %v832_v14  ;;  %808 = vmatmul.msk.bf16.gmra.mxu3 %vm271_vm1, %v834_v15 }
  0xa1   : > { %v309_v17 = vpop.f32.mrf.mxu0  ;;  %v319_v18 = vpop.f32.mrf.mxu1 }
  0xa2   : > { %v998_v19 = vadd.f32 %v995_v16, %v309_v17  ;;  %v1001_v20 = vadd.f32 %v995_v16, %v319_v18 }
  0xa4   : > { %v809_v21 = vmul.f32 -1.442695, %v998_v19  ;;  %v813_v22 = vmul.f32 -1.442695, %v1001_v20 }
  0xa6   : > { %863 = vpow2.f32 %v809_v21 }
  0xa7   : > { %865 = vpow2.f32 %v813_v22 }
  0xa8   : > { %v329_v23 = vpop.f32.mrf.mxu2  ;;  %v339_v24 = vpop.f32.mrf.mxu3 }
  0xa9   : > { %v1006_v25 = vadd.f32 %v995_v16, %v329_v23  ;;  %v1009_v26 = vadd.f32 %v995_v16, %v339_v24  ;;  %v311_v27 = vpop.f32.mrf.mxu0  ;;  %v321_v28 = vpop.f32.mrf.mxu1 }
  0xaa   : > { %v1012_v29 = vadd.f32 %v995_v16, %v311_v27  ;;  %v1015_v30 = vadd.f32 %v995_v16, %v321_v28 }
  0xab   : > { %v817_v31 = vmul.f32 -1.442695, %v1006_v25  ;;  %v821_v32 = vmul.f32 -1.442695, %v1009_v26 }
  0xac   : > { %v864_v33 = vpop.eup %863  ;;  %v810_v37 = vmul.f32 -1.442695, %v1012_v29  ;;  %v814_v39 = vmul.f32 -1.442695, %v1015_v30 }
  0xad   : > { %v866_v34 = vpop.eup %865  ;;  %v1019_v36 = vadd.f32 1.0, %v864_v33  ;;  %867 = vpow2.f32 %v817_v31 }
  0xae   : > { %v1022_v38 = vadd.f32 1.0, %v866_v34  ;;  %869 = vpow2.f32 %v821_v32 }
  0xaf   : > { %871 = vrcp.f32 %v1019_v36  ;;  %v425_v45 = vand.u32 2147483647, %v1019_v36  ;;  %v427_v46 = vand.u32 2147483648, %v1019_v36  ;;  %vm421_vm3 = vweird.f32 %v1019_v36 }
  0xb0   : > { %873 = vrcp.f32 %v1022_v38  ;;  %v331_v40 = vpop.f32.mrf.mxu2  ;;  %v341_v41 = vpop.f32.mrf.mxu3  ;;  %v485_v48 = vand.u32 2147483647, %v1022_v38  ;;  %v487_v49 = vand.u32 2147483648, %v1022_v38  ;;  %vm481_vm4 = vweird.f32 %v1022_v38 }
  0xb1   : > { %875 = vpow2.f32 %v810_v37  ;;  %v1030_v43 = vadd.f32 %v995_v16, %v331_v40  ;;  %v314_v44 = vpop.f32.mrf.mxu0  ;;  %v1038_v51 = vadd.f32 %v995_v16, %v341_v41  ;;  %v324_v57 = vpop.f32.mrf.mxu1  ;;  %vm1051_vm5 = vcmp.eq.f32.partialorder %v425_v45, 8.507059e+37 }
  0xb2   : > { %877 = vpow2.f32 %v814_v39  ;;  %v1043_v54 = vadd.f32 %v995_v16, %v314_v44  ;;  %v428_v61 = vor.u32 1.1754944e-38, %v427_v46  ;;  %vm1057_vm6 = vcmp.eq.f32.partialorder %v485_v48, 8.507059e+37 }
  0xb3   : > { %v868_v47 = vpop.eup %867  ;;  %v818_v50 = vmul.f32 -1.442695, %v1030_v43  ;;  %v488_v1 = vor.u32 1.1754944e-38, %v487_v49  ;;  %v822_v2 = vmul.f32 -1.442695, %v1038_v51  ;;  %v1065_v6 = vadd.f32 %v995_v16, %v324_v57 }
  0xb4   : > { %v870_v52 = vpop.eup %869  ;;  %v1040_v53 = vadd.f32 1.0, %v868_v47  ;;  %v811_v5 = vmul.f32 -1.442695, %v1043_v54 }
  0xb5   : > { %v872_v55 = vpop.eup %871  ;;  %v1048_v56 = vadd.f32 1.0, %v870_v52  ;;  %v1079_v21 = vmul.f32 -1.442695, %v1065_v6 }
  0xb6   : > { %v874_v58 = vpop.eup %873  ;;  %v417_v59 = vmul.f32 %v872_v55, %v1019_v36  ;;  %879 = vrcp.f32 %v1040_v53  ;;  %vm422_vm7 = vweird.f32 %v872_v55  ;;  %v545_v8 = vand.u32 2147483647, %v1040_v53 }
  0xb7   : > { %v876_v62 = vpop.eup %875  ;;  %v477_v63 = vmul.f32 %v874_v58, %v1022_v38  ;;  %881 = vpow2.f32 %v818_v50  ;;  %v547_v9 = vand.u32 2147483648, %v1040_v53  ;;  %v607_v11 = vand.u32 2147483648, %v1048_v56  ;;  %vm423_vm10 = vmor %vm421_vm3, %vm422_vm7 }
  0xb8   : > { %v878_v3 = vpop.eup %877  ;;  %v418_v4 = vsub.f32 1.0, %v417_v59  ;;  %883 = vrcp.f32 %v1048_v56  ;;  %v1070_v12 = vadd.f32 1.0, %v876_v62  ;;  %vm482_vm8 = vweird.f32 %v874_v58  ;;  %v334_v28 = vpop.f32.mrf.mxu2 }
  0xb9   : > { %v478_v7 = vsub.f32 1.0, %v477_v63  ;;  %v1072_v13 = vadd.f32 1.0, %v878_v3  ;;  %v605_v15 = vand.u32 2147483647, %v1048_v56  ;;  %885 = vpow2.f32 %v822_v2  ;;  %vm483_vm13 = vmor %vm481_vm4, %vm482_vm8 }
  0xba   : > { %v419_v10 = vmul.f32 %v872_v55, %v418_v4  ;;  %vm541_vm9 = vweird.f32 %v1040_v53  ;;  %887 = vrcp.f32 %v1070_v12  ;;  %vm1085_vm11 = vcmp.eq.f32.partialorder %v545_v8, 8.507059e+37 }
  0xbb   : > { %v479_v14 = vmul.f32 %v874_v58, %v478_v7  ;;  %vm601_vm12 = vweird.f32 %v1048_v56  ;;  %v548_v33 = vor.u32 1.1754944e-38, %v547_v9  ;;  %v608_v34 = vor.u32 1.1754944e-38, %v607_v11 }
  0xbc   : > { %v880_v17 = vpop.eup %879  ;;  %v420_v18 = vadd.f32 %v872_v55, %v419_v10  ;;  %889 = vrcp.f32 %v1072_v13  ;;  %vm1102_vm14 = vcmp.eq.f32.partialorder %v605_v15, 8.507059e+37  ;;  %v440_v44 = vand.u32 2147483647, %v1070_v12  ;;  %v344_v15 = vpop.f32.mrf.mxu3 }
  0xbd   : > { %v882_v22 = vpop.eup %881  ;;  %v480_v23 = vadd.f32 %v874_v58, %v479_v14  ;;  %v537_v24 = vmul.f32 %v880_v17, %v1040_v53  ;;  %v1113_v45 = vadd.f32 %v995_v16, %v334_v28  ;;  %vm542_vm15 = vweird.f32 %v880_v17 }
  0xbe   : > { %v884_v31 = vpop.eup %883  ;;  %v424_v32 = vsel %vm423_vm10, %v872_v55, %v420_v18  ;;  %vm436_vm0 = vweird.f32 %v1070_v12  ;;  %v1122_v52 = vadd.f32 1.0, %v882_v22  ;;  %891 = vpow2.f32 %v811_v5  ;;  %vm543_vm3 = vmor %vm541_vm9, %vm542_vm15 }
  0xbf   : > { %v429_v35 = vsel %vm1051_vm5, %v428_v61, %v424_v32  ;;  %v484_v36 = vsel %vm483_vm13, %v874_v58, %v480_v23  ;;  %v538_v37 = vsub.f32 1.0, %v537_v24  ;;  %v597_v39 = vmul.f32 %v884_v31, %v1048_v56  ;;  %v886_v46 = vpop.eup %885 }
  0xc0   : > { %v656_v38 = vsel %vm351_vm2, %v429_v35, %v998_v19  ;;  %v489_v41 = vsel %vm1057_vm6, %v488_v1, %v484_v36  ;;  %v888_v50 = vpop.eup %887  ;;  %v442_v19 = vand.u32 2147483648, %v1070_v12  ;;  %vm602_vm1 = vweird.f32 %v884_v31 }
  0xc1   : > { %672 = vst [vmem:[%s1093_s7] sm:$0xff] %v656_v38  ;;  %v660_v47 = vsel %vm351_vm2, %v489_v41, %v1001_v20  ;;  %v539_v48 = vmul.f32 %v880_v17, %v538_v37  ;;  %v598_v49 = vsub.f32 1.0, %v597_v39  ;;  %v432_v58 = vmul.f32 %v888_v50, %v1070_v12  ;;  %vm603_vm5 = vmor %vm601_vm12, %vm602_vm1  ;;  %v316_v41 = vpop.f32.mrf.mxu0  ;;  %v336_v20 = vpop.f32.mrf.mxu2 }
  0xc2   : > { %676 = vst [vmem:[%s1093_s7 + $0x20] sm:$0xff] %v660_v47  ;;  %v890_v59 = vpop.eup %889  ;;  %vm1127_vm4 = vcmp.eq.f32.partialorder %v440_v44, 8.507059e+37  ;;  %v500_v60 = vand.u32 2147483647, %v1072_v13  ;;  %893 = vrcp.f32 %v1122_v52  ;;  %v1133_v61 = vadd.f32 1.0, %v886_v46  ;;  %v326_v44 = vpop.f32.mrf.mxu1 }
  0xc3   : > { %v540_v55 = vadd.f32 %v880_v17, %v539_v48  ;;  %v599_v57 = vmul.f32 %v884_v31, %v598_v49  ;;  %v433_v0 = vsub.f32 1.0, %v432_v58  ;;  %v492_v1 = vmul.f32 %v890_v59, %v1072_v13 }
  0xc4   : > { %vm437_vm6 = vweird.f32 %v888_v50  ;;  %vm496_vm7 = vweird.f32 %v1072_v13  ;;  %v502_v2 = vand.u32 2147483648, %v1072_v13  ;;  %v892_v8 = vpop.eup %891  ;;  %v443_v56 = vor.u32 1.1754944e-38, %v442_v19 }
  0xc5   : > { %v544_v62 = vsel %vm543_vm3, %v880_v17, %v540_v55  ;;  %v600_v63 = vadd.f32 %v884_v31, %v599_v57  ;;  %v434_v5 = vmul.f32 %v888_v50, %v433_v0  ;;  %v493_v7 = vsub.f32 1.0, %v492_v1  ;;  %vm438_vm10 = vmor %vm436_vm0, %vm437_vm6  ;;  %v346_v0 = vpop.f32.mrf.mxu3 }
  0xc6   : > { %v549_v53 = vsel %vm1085_vm11, %v548_v33, %v544_v62  ;;  %vm1148_vm8 = vcmp.eq.f32.partialorder %v500_v60, 8.507059e+37  ;;  %895 = vrcp.f32 %v1133_v61  ;;  %vm497_vm9 = vweird.f32 %v890_v59 }
  0xc7   : > { %v664_v3 = vsel %vm351_vm2, %v549_v53, %v1006_v25  ;;  %v604_v4 = vsel %vm603_vm5, %v884_v31, %v600_v63  ;;  %v435_v11 = vadd.f32 %v888_v50, %v434_v5  ;;  %v494_v14 = vmul.f32 %v890_v59, %v493_v7  ;;  %vm498_vm11 = vmor %vm496_vm7, %vm497_vm9 }
  0xc8   : > { %680 = vst [vmem:[%s1093_s7 + $0x40] sm:$0xff] %v664_v3  ;;  %v609_v9 = vsel %vm1102_vm14, %v608_v34, %v604_v4  ;;  %v894_v17 = vpop.eup %893  ;;  %v560_v18 = vand.u32 2147483647, %v1122_v52  ;;  %v562_v22 = vand.u32 2147483648, %v1122_v52  ;;  %v1162_v23 = vadd.f32 1.0, %v892_v8 }
  0xc9   : > { %v668_v25 = vsel %vm351_vm2, %v609_v9, %v1009_v26  ;;  %897 = vpow2.f32 %v1079_v21  ;;  %v439_v26 = vsel %vm438_vm10, %v888_v50, %v435_v11  ;;  %v495_v24 = vadd.f32 %v890_v59, %v494_v14 }
  0xca   : > { %684 = vst [vmem:[%s1093_s7 + $0x60] sm:$0xff] %v668_v25  ;;  %v503_v27 = vor.u32 1.1754944e-38, %v502_v2  ;;  %v552_v28 = vmul.f32 %v894_v17, %v1122_v52  ;;  %v444_v31 = vsel %vm1127_vm4, %v443_v56, %v439_v26  ;;  %vm556_vm12 = vweird.f32 %v1122_v52 }
  0xcb   : > { %v620_v12 = vand.u32 2147483647, %v1133_v61  ;;  %899 = vrcp.f32 %v1162_v23  ;;  %v657_v21 = vsel %vm351_vm2, %v444_v31, %v1012_v29  ;;  %v499_v32 = vsel %vm498_vm11, %v890_v59, %v495_v24 }
  0xcc   : > { %v553_v33 = vsub.f32 1.0, %v552_v28  ;;  %v622_v34 = vand.u32 2147483648, %v1133_v61  ;;  %v896_v35 = vpop.eup %895  ;;  %673 = vst [vmem:[%s1093_s7 + $0x8] sm:$0xff] %v657_v21  ;;  %v504_v13 = vsel %vm1148_vm8, %v503_v27, %v499_v32  ;;  %vm1180_vm13 = vcmp.eq.f32.partialorder %v560_v18, 8.507059e+37 }
  0xcd   : > { %v563_v37 = vor.u32 1.1754944e-38, %v562_v22  ;;  %v819_v39 = vmul.f32 -1.442695, %v1113_v45  ;;  %v661_v29 = vsel %vm351_vm2, %v504_v13, %v1015_v30  ;;  %vm557_vm14 = vweird.f32 %v894_v17 }
  0xce   : > { %v554_v40 = vmul.f32 %v894_v17, %v553_v33  ;;  %v612_v38 = vmul.f32 %v896_v35, %v1133_v61  ;;  %677 = vst [vmem:[%s1093_s7 + $0x28] sm:$0xff] %v661_v29  ;;  %vm616_vm15 = vweird.f32 %v1133_v61  ;;  %vm1191_vm0 = vcmp.eq.f32.partialorder %v620_v12, 8.507059e+37  ;;  %vm558_vm1 = vmor %vm556_vm12, %vm557_vm14 }
  0xcf   : > { %v898_v46 = vpop.eup %897  ;;  %901 = vpow2.f32 %v819_v39  ;;  %v1196_v48 = vadd.f32 %v995_v16, %v344_v15  ;;  %v623_v50 = vor.u32 1.1754944e-38, %v622_v34  ;;  %vm451_vm3 = vweird.f32 %v1162_v23 }
  0xd0   : > { %v555_v49 = vadd.f32 %v894_v17, %v554_v40  ;;  %v613_v30 = vsub.f32 1.0, %v612_v38  ;;  %v1198_v19 = vadd.f32 1.0, %v898_v46  ;;  %v1206_v58 = vadd.f32 %v995_v16, %v316_v41 }
  0xd1   : > { %v900_v55 = vpop.eup %899  ;;  %v823_v57 = vmul.f32 -1.442695, %v1196_v48  ;;  %v1209_v59 = vadd.f32 %v995_v16, %v326_v44  ;;  %vm617_vm4 = vweird.f32 %v896_v35  ;;  %v455_v1 = vand.u32 2147483647, %v1162_v23 }
  0xd2   : > { %v559_v60 = vsel %vm558_vm1, %v894_v17, %v555_v49  ;;  %v614_v62 = vmul.f32 %v896_v35, %v613_v30  ;;  %v447_v63 = vmul.f32 %v900_v55, %v1162_v23  ;;  %v457_v53 = vand.u32 2147483648, %v1162_v23  ;;  %vm618_vm5 = vmor %vm616_vm15, %vm617_vm4 }
  0xd3   : > { %v564_v52 = vsel %vm1180_vm13, %v563_v37, %v559_v60  ;;  %903 = vrcp.f32 %v1198_v19  ;;  %v1221_v5 = vadd.f32 %v995_v16, %v336_v20  ;;  %v812_v8 = vmul.f32 -1.442695, %v1206_v58 }
  0xd4   : > { %v665_v2 = vsel %vm351_vm2, %v564_v52, %v1030_v43  ;;  %v615_v3 = vadd.f32 %v896_v35, %v614_v62  ;;  %v448_v4 = vsub.f32 1.0, %v447_v63  ;;  %905 = vpow2.f32 %v823_v57 }
  0xd5   : > { %v902_v7 = vpop.eup %901  ;;  %681 = vst [vmem:[%s1093_s7 + $0x48] sm:$0xff] %v665_v2  ;;  %v816_v9 = vmul.f32 -1.442695, %v1209_v59  ;;  %v1229_v56 = vadd.f32 %v995_v16, %v346_v0  ;;  %vm452_vm6 = vweird.f32 %v900_v55  ;;  %907 = vpow2.f32 %v812_v8 }
  0xd6   : > { %v619_v43 = vsel %vm618_vm5, %v896_v35, %v615_v3  ;;  %v449_v10 = vmul.f32 %v900_v55, %v448_v4  ;;  %v1231_v25 = vadd.f32 1.0, %v902_v7  ;;  %v820_v15 = vmul.f32 -1.442695, %v1221_v5  ;;  %vm453_vm7 = vmor %vm451_vm3, %vm452_vm6 }
  0xd7   : > { %v624_v11 = vsel %vm1191_vm0, %v623_v50, %v619_v43  ;;  %v458_v17 = vor.u32 1.1754944e-38, %v457_v53  ;;  %v824_v18 = vmul.f32 -1.442695, %v1229_v56  ;;  %vm456_vm8 = vcmp.eq.f32.partialorder %v455_v1, 8.507059e+37 }
  0xd8   : > { %v669_v61 = vsel %vm351_vm2, %v624_v11, %v1038_v51  ;;  %v450_v14 = vadd.f32 %v900_v55, %v449_v10  ;;  %909 = vrcp.f32 %v1231_v25  ;;  %vm511_vm9 = vweird.f32 %v1198_v19 }
  0xd9   : > { %v904_v16 = vpop.eup %903  ;;  %685 = vst [vmem:[%s1093_s7 + $0x68] sm:$0xff] %v669_v61  ;;  %911 = vpow2.f32 %v816_v9  ;;  %v517_v12 = vand.u32 2147483648, %v1198_v19  ;;  %v515_v33 = vand.u32 2147483647, %v1198_v19  ;;  %v577_v38 = vand.u32 2147483648, %v1231_v25 }
  0xda   : > { %v454_v22 = vsel %vm453_vm7, %v900_v55, %v450_v14  ;;  %v507_v26 = vmul.f32 %v904_v16, %v1198_v19  ;;  %v906_v51 = vpop.eup %905  ;;  %913 = vpow2.f32 %v820_v15  ;;  %vm512_vm10 = vweird.f32 %v904_v16 }
  0xdb   : > { %v459_v24 = vsel %vm456_vm8, %v458_v17, %v454_v22  ;;  %v1248_v31 = vadd.f32 1.0, %v906_v51  ;;  %v908_v23 = vpop.eup %907  ;;  %915 = vpow2.f32 %v824_v18  ;;  %vm513_vm11 = vmor %vm511_vm9, %vm512_vm10  ;;  %v518_v37 = vor.u32 1.1754944e-38, %v517_v12 }
  0xdc   : > { %v658_v27 = vsel %vm351_vm2, %v459_v24, %v1043_v54  ;;  %v508_v28 = vsub.f32 1.0, %v507_v26  ;;  %v1256_v35 = vadd.f32 1.0, %v908_v23  ;;  %vm516_vm12 = vcmp.eq.f32.partialorder %v515_v33, 8.507059e+37 }
  0xdd   : > { %674 = vst [vmem:[%s1093_s7 + $0x10] sm:$0xff] %v658_v27  ;;  %917 = vrcp.f32 %v1248_v31  ;;  %v575_v47 = vand.u32 2147483647, %v1231_v25  ;;  %vm571_vm14 = vweird.f32 %v1231_v25  ;;  %v578_v55 = vor.u32 1.1754944e-38, %v577_v38 }
  0xde   : > { %v910_v21 = vpop.eup %909  ;;  %v509_v32 = vmul.f32 %v904_v16, %v508_v28  ;;  %919 = vrcp.f32 %v1256_v35  ;;  %v635_v57 = vand.u32 2147483647, %v1248_v31  ;;  %v637_v20 = vand.u32 2147483648, %v1248_v31 }
  0xdf   : > { %v912_v34 = vpop.eup %911  ;;  %v567_v54 = vmul.f32 %v910_v21, %v1231_v25  ;;  %vm572_vm13 = vweird.f32 %v910_v21  ;;  %vm576_vm0 = vcmp.eq.f32.partialorder %v575_v47, 8.507059e+37  ;;  %vm631_vm3 = vweird.f32 %v1248_v31 }
  0xe0   : > { %v510_v13 = vadd.f32 %v904_v16, %v509_v32  ;;  %v1258_v36 = vadd.f32 1.0, %v912_v34  ;;  %v914_v29 = vpop.eup %913  ;;  %vm573_vm15 = vmor %vm571_vm14, %vm572_vm13  ;;  %vm1284_vm4 = vcmp.eq.f32.partialorder %v635_v57, 8.507059e+37  ;;  %v638_v8 = vor.u32 1.1754944e-38, %v637_v20 }
  0xe1   : > { %v568_v39 = vsub.f32 1.0, %v567_v54  ;;  %v916_v41 = vpop.eup %915  ;;  %v1272_v60 = vadd.f32 1.0, %v914_v29  ;;  %v472_v10 = vand.u32 2147483648, %v1256_v35  ;;  %v470_v11 = vand.u32 2147483647, %v1256_v35 }
  0xe2   : > { %v514_v40 = vsel %vm513_vm11, %v904_v16, %v510_v13  ;;  %921 = vrcp.f32 %v1258_v36  ;;  %v532_v61 = vand.u32 2147483648, %v1258_v36  ;;  %v530_v16 = vand.u32 2147483647, %v1258_v36 }
  0xe3   : > { %v519_v44 = vsel %vm516_vm12, %v518_v37, %v514_v40  ;;  %v569_v46 = vmul.f32 %v910_v21, %v568_v39  ;;  %v918_v49 = vpop.eup %917  ;;  %923 = vrcp.f32 %v1272_v60  ;;  %vm466_vm8 = vweird.f32 %v1256_v35 }
  0xe4   : > { %v662_v30 = vsel %vm351_vm2, %v519_v44, %v1065_v6  ;;  %v627_v19 = vmul.f32 %v918_v49, %v1248_v31  ;;  %v920_v62 = vpop.eup %919  ;;  %v1274_v6 = vadd.f32 1.0, %v916_v41  ;;  %vm632_vm1 = vweird.f32 %v918_v49 }
  0xe5   : > { %678 = vst [vmem:[%s1093_s7 + $0x30] sm:$0xff] %v662_v30  ;;  %v570_v50 = vadd.f32 %v910_v21, %v569_v46  ;;  %v462_v53 = vmul.f32 %v920_v62, %v1256_v35  ;;  %vm633_vm5 = vmor %vm631_vm3, %vm632_vm1  ;;  %vm467_vm6 = vweird.f32 %v920_v62  ;;  %vm526_vm9 = vweird.f32 %v1258_v36 }
  0xe6   : > { %v628_v0 = vsub.f32 1.0, %v627_v19  ;;  %925 = vrcp.f32 %v1274_v6  ;;  %vm468_vm10 = vmor %vm466_vm8, %vm467_vm6  ;;  %v473_v51 = vor.u32 1.1754944e-38, %v472_v10  ;;  %vm471_vm11 = vcmp.eq.f32.partialorder %v470_v11, 8.507059e+37 }
  0xe7   : > { %v574_v63 = vsel %vm573_vm15, %v910_v21, %v570_v50  ;;  %v463_v9 = vsub.f32 1.0, %v462_v53  ;;  %v533_v31 = vor.u32 1.1754944e-38, %v532_v61  ;;  %vm531_vm13 = vcmp.eq.f32.partialorder %v530_v16, 8.507059e+37 }
  0xe8   : > { %v922_v52 = vpop.eup %921  ;;  %v579_v1 = vsel %vm576_vm0, %v578_v55, %v574_v63  ;;  %v629_v3 = vmul.f32 %v918_v49, %v628_v0  ;;  %v592_v34 = vand.u32 2147483648, %v1272_v60  ;;  %vm586_vm15 = vweird.f32 %v1272_v60 }
  0xe9   : > { %v666_v2 = vsel %vm351_vm2, %v579_v1, %v1113_v45  ;;  %v522_v4 = vmul.f32 %v922_v52, %v1258_v36  ;;  %v464_v45 = vmul.f32 %v920_v62, %v463_v9  ;;  %vm527_vm7 = vweird.f32 %v922_v52  ;;  %v924_v17 = vpop.eup %923 }
  0xea   : > { %682 = vst [vmem:[%s1093_s7 + $0x50] sm:$0xff] %v666_v2  ;;  %v630_v43 = vadd.f32 %v918_v49, %v629_v3  ;;  %v582_v27 = vmul.f32 %v924_v17, %v1272_v60  ;;  %vm528_vm12 = vmor %vm526_vm9, %vm527_vm7  ;;  %vm587_vm14 = vweird.f32 %v924_v17  ;;  %v590_v36 = vand.u32 2147483647, %v1272_v60 }
  0xeb   : > { %v523_v25 = vsub.f32 1.0, %v522_v4  ;;  %v465_v22 = vadd.f32 %v920_v62, %v464_v45  ;;  %vm588_vm0 = vmor %vm586_vm15, %vm587_vm14  ;;  %v593_v29 = vor.u32 1.1754944e-38, %v592_v34  ;;  %v650_v38 = vand.u32 2147483647, %v1274_v6 }
  0xec   : > { %v634_v14 = vsel %vm633_vm5, %v918_v49, %v630_v43  ;;  %v926_v23 = vpop.eup %925  ;;  %v583_v32 = vsub.f32 1.0, %v582_v27  ;;  %vm591_vm3 = vcmp.eq.f32.partialorder %v590_v36, 8.507059e+37 }
  0xed   : > { %v524_v15 = vmul.f32 %v922_v52, %v523_v25  ;;  %v639_v18 = vsel %vm1284_vm4, %v638_v8, %v634_v14  ;;  %v469_v28 = vsel %vm468_vm10, %v920_v62, %v465_v22  ;;  %v642_v54 = vmul.f32 %v926_v23, %v1274_v6 }
  0xee   : > { %v670_v26 = vsel %vm351_vm2, %v639_v18, %v1196_v48  ;;  %v474_v12 = vsel %vm471_vm11, %v473_v51, %v469_v28  ;;  %v584_v13 = vmul.f32 %v924_v17, %v583_v32  ;;  %vm647_vm1 = vweird.f32 %v926_v23 }
  0xef   : > { %v525_v24 = vadd.f32 %v922_v52, %v524_v15  ;;  %686 = vst [vmem:[%s1093_s7 + $0x70] sm:$0xff] %v670_v26  ;;  %v659_v48 = vsel %vm351_vm2, %v474_v12, %v1206_v58  ;;  %v643_v37 = vsub.f32 1.0, %v642_v54  ;;  %v652_v58 = vand.u32 2147483648, %v1274_v6 }
  0xf0   : > { %675 = vst [vmem:[%s1093_s7 + $0x18] sm:$0xff] %v659_v48  ;;  %v585_v39 = vadd.f32 %v924_v17, %v584_v13  ;;  %vm646_vm4 = vweird.f32 %v1274_v6  ;;  %vm651_vm6 = vcmp.eq.f32.partialorder %v650_v38, 8.507059e+37 }
  0xf1   : > { %v529_v21 = vsel %vm528_vm12, %v922_v52, %v525_v24  ;;  %v644_v40 = vmul.f32 %v926_v23, %v643_v37  ;;  %vm648_vm5 = vmor %vm646_vm4, %vm647_vm1  ;;  %v653_v47 = vor.u32 1.1754944e-38, %v652_v58 }
  0xf2   : > { %v534_v33 = vsel %vm531_vm13, %v533_v31, %v529_v21 }
  0xf3   : > { %v663_v35 = vsel %vm351_vm2, %v534_v33, %v1209_v59  ;;  %v589_v59 = vsel %vm588_vm0, %v924_v17, %v585_v39  ;;  %v645_v44 = vadd.f32 %v926_v23, %v644_v40 }
  0xf4   : > { %679 = vst [vmem:[%s1093_s7 + $0x38] sm:$0xff] %v663_v35  ;;  %v594_v41 = vsel %vm591_vm3, %v593_v29, %v589_v59 }
  0xf5   : > { %v667_v46 = vsel %vm351_vm2, %v594_v41, %v1221_v5  ;;  %v649_v49 = vsel %vm648_vm5, %v926_v23, %v645_v44 }
  0xf6   : > { %683 = vst [vmem:[%s1093_s7 + $0x58] sm:$0xff] %v667_v46  ;;  %v654_v30 = vsel %vm651_vm6, %v653_v47, %v649_v49 }
  0xf7   : > { %v671_v50 = vsel %vm351_vm2, %v654_v30, %v1229_v56 }
  0xf8   : > { %687 = vst [vmem:[%s1093_s7 + $0x78] sm:$0xff] %v671_v50 }
  0xf9 PF: > { %s13_s12 = sadd.s32 1, %s933_s12  }
  0xfa   : > { %p10_p4 = scmp.ge.s32.totalorder %s13_s12, 6  }
  0xfc   :  { %12 = sbr.rel (!%p10_p4) target bundleno = 1 (0x1), region = 62 }

// kernel: stff_forward.7
= control target key start
LH: loop header
LB: loop body
LE: loop exit
PB: predicated region body
PF: predicated region fallthrough
CT: control target
= control target key end

     0   :  { %s536_s12 = smov 0   ;;  %s595_s0 = inlined_call_operand.vmem [shape: bf16[512,36], index: 0, kind: input, shape index: {}]   ;;  %s596_s1 = inlined_call_operand.vmem [shape: bf16[36,128], index: 1, kind: input, shape index: {}]   ;;  %s597_s2 = inlined_call_operand.vmem [shape: f32[1,128], index: 2, kind: input, shape index: {}]   ;;  %s598_s3 = inlined_call_operand.vmem [shape: f32[512,128], index: 3, kind: output, shape index: {}]  }
   0x1 LB: > { %s421_s13 = sadd.s32 4294967295, %s514_s12   ;;  %p425_p0 = scmp.ge.s32.totalorder %s514_s12, 1  ;;  %s514_s12 = sphi %s536_s12, %s13_s12  }
   0x2   : > { %p138_p1 = scmp.lt.s32.totalorder %s514_s12, 5 }
   0x4   : > { %p139_p2 = pnand %p425_p0, %p138_p1 }
   0x5   : > { %s426_s16 = sshll.u32 (!%p139_p2), %s421_s13, 4 }
   0x6   : > { %142 = sbr.rel (%p139_p2) target bundleno = 191 (0xbf), region = 32  ;;  %p163_p3 = scmp.lt.s32.totalorder (!%p139_p2), %s426_s16, 63 }
   0xb   : > { %v195_v0 = vld [vmem:[%s596_s1 + $0x10] sm:$0x3]  ;;  %vm280_vm0 = vcmask 1041408   ;;  %s600_s16 = smov (!%p163_p3, %s426_s16), 63  ;;  %v489_v4 = vld [vmem:[%s596_s1 + $0x8] sm:$0xff]  ;;  %v488_v5 = vld [vmem:[%s596_s1] sm:$0xff] }
   0xc   : > { %v249_v1 = vunpack.c.l.b16 %v195_v0  ;;  %s427_s19 = sshll.u32 %s600_s16, 2  ;;  %vm255_vm1 = vcmask 293888   ;;  %v507_v14 = vld [vmem:[%s597_s2] ss:$0 sm:$0xff]  ;;  %s429_s27 = sshll.u32 %s600_s16, 3 }
   0xd   : > { %s166_s24 = scalar_lea.vmem %s595_s0, %s427_s19  ;;  %s574_s30 = scalar_lea.vmem %s598_s3, %s429_s27 }
   0xe   : > { %v252_v2 = vpack.c.b16 %v249_v1, %v249_v1  ;;  %v480_v6 = vld [vmem:[%s166_s24] sm:$0xff]  ;;  %v482_v7 = vld [vmem:[%s166_s24 + $0x10] sm:$0xff]  ;;  %v481_v10 = vld [vmem:[%s166_s24 + $0x8] sm:$0xff] }
   0xf   : > { %v484_v8 = vld [vmem:[%s166_s24 + $0x20] sm:$0xff]  ;;  %v486_v9 = vld [vmem:[%s166_s24 + $0x30] sm:$0xff]  ;;  %v483_v11 = vld [vmem:[%s166_s24 + $0x18] sm:$0xff] }
  0x10   : > { %v282_v3 = vsel %vm280_vm0, %v252_v2, 0  ;;  %v485_v12 = vld [vmem:[%s166_s24 + $0x28] sm:$0xff]  ;;  %v487_v13 = vld [vmem:[%s166_s24 + $0x38] sm:$0xff] }
  0x11   : > { %289 = vmatpush.bf16.msra.mxu0 %v282_v3  ;;  %490 = vmatpush.bf16.msra.mxu1 %v282_v3 }
  0x12   : > { %491 = vmatpush.bf16.msra.mxu2 %v282_v3  ;;  %492 = vmatpush.bf16.msra.mxu3 %v282_v3 }
  0x15   : > { %290 = vmatpush.bf16.msra.mxu0 %v489_v4  ;;  %493 = vmatpush.bf16.msra.mxu1 %v489_v4 }
  0x16   : > { %494 = vmatpush.bf16.msra.mxu2 %v489_v4  ;;  %495 = vmatpush.bf16.msra.mxu3 %v489_v4 }
  0x19   : > { %291 = vmatpush.bf16.msra.mxu0 %v488_v5  ;;  %496 = vmatpush.bf16.msra.mxu1 %v488_v5 }
  0x1a   : > { %497 = vmatpush.bf16.msra.mxu2 %v488_v5  ;;  %498 = vmatpush.bf16.msra.mxu3 %v488_v5 }
  0x1c   : > { %470 = vmatmul.msk.bf16.vlgmr.msra.gmra.mxu0 %vm255_vm1, %v480_v6  ;;  %472 = vmatmul.msk.bf16.vlgmr.msra.gmra.mxu1 %vm255_vm1, %v482_v7 }
  0x1d   : > { %474 = vmatmul.msk.bf16.vlgmr.msra.gmra.mxu2 %vm255_vm1, %v484_v8  ;;  %476 = vmatmul.msk.bf16.vlgmr.msra.gmra.mxu3 %vm255_vm1, %v486_v9 }
  0x2c   : > { %471 = vmatmul.msk.bf16.gmra.mxu0 %vm255_vm1, %v481_v10  ;;  %473 = vmatmul.msk.bf16.gmra.mxu1 %vm255_vm1, %v483_v11 }
  0x2d   : > { %475 = vmatmul.msk.bf16.gmra.mxu2 %vm255_vm1, %v485_v12  ;;  %477 = vmatmul.msk.bf16.gmra.mxu3 %vm255_vm1, %v487_v13 }
  0x99   : > { %v293_v15 = vpop.f32.mrf.mxu0  ;;  %v303_v16 = vpop.f32.mrf.mxu1 }
  0x9a   : > { %v294_v17 = vadd.f32 %v507_v14, %v293_v15  ;;  %v304_v18 = vadd.f32 %v507_v14, %v303_v16 }
  0x9c   : > { %v333_v19 = vmax.f32 %v294_v17, 0.0  ;;  %v337_v20 = vmax.f32 %v304_v18, 0.0 }
  0x9e   : > { %349 = vst [vmem:[%s574_s30] sm:$0xff] %v333_v19 }
  0x9f   : > { %353 = vst [vmem:[%s574_s30 + $0x20] sm:$0xff] %v337_v20 }
  0xa0   : > { %v313_v21 = vpop.f32.mrf.mxu2  ;;  %v323_v22 = vpop.f32.mrf.mxu3 }
  0xa1   : > { %v314_v23 = vadd.f32 %v507_v14, %v313_v21  ;;  %v324_v24 = vadd.f32 %v507_v14, %v323_v22  ;;  %v295_v25 = vpop.f32.mrf.mxu0  ;;  %v305_v26 = vpop.f32.mrf.mxu1 }
  0xa2   : > { %v296_v27 = vadd.f32 %v507_v14, %v295_v25  ;;  %v306_v28 = vadd.f32 %v507_v14, %v305_v26 }
  0xa3   : > { %v341_v29 = vmax.f32 %v314_v23, 0.0  ;;  %v345_v30 = vmax.f32 %v324_v24, 0.0 }
  0xa4   : > { %v334_v31 = vmax.f32 %v296_v27, 0.0  ;;  %v338_v32 = vmax.f32 %v306_v28, 0.0 }
  0xa5   : > { %357 = vst [vmem:[%s574_s30 + $0x40] sm:$0xff] %v341_v29 }
  0xa6   : > { %361 = vst [vmem:[%s574_s30 + $0x60] sm:$0xff] %v345_v30 }
  0xa7   : > { %350 = vst [vmem:[%s574_s30 + $0x8] sm:$0xff] %v334_v31 }
  0xa8   : > { %354 = vst [vmem:[%s574_s30 + $0x28] sm:$0xff] %v338_v32  ;;  %v315_v33 = vpop.f32.mrf.mxu2  ;;  %v325_v34 = vpop.f32.mrf.mxu3 }
  0xa9   : > { %v316_v35 = vadd.f32 %v507_v14, %v315_v33  ;;  %v326_v36 = vadd.f32 %v507_v14, %v325_v34  ;;  %v298_v37 = vpop.f32.mrf.mxu0  ;;  %v308_v38 = vpop.f32.mrf.mxu1 }
  0xaa   : > { %v299_v39 = vadd.f32 %v507_v14, %v298_v37  ;;  %v309_v40 = vadd.f32 %v507_v14, %v308_v38 }
  0xab   : > { %v342_v41 = vmax.f32 %v316_v35, 0.0  ;;  %v346_v42 = vmax.f32 %v326_v36, 0.0 }
  0xac   : > { %v335_v43 = vmax.f32 %v299_v39, 0.0  ;;  %v339_v44 = vmax.f32 %v309_v40, 0.0 }
  0xad   : > { %358 = vst [vmem:[%s574_s30 + $0x48] sm:$0xff] %v342_v41 }
  0xae   : > { %362 = vst [vmem:[%s574_s30 + $0x68] sm:$0xff] %v346_v42 }
  0xaf   : > { %351 = vst [vmem:[%s574_s30 + $0x10] sm:$0xff] %v335_v43 }
  0xb0   : > { %355 = vst [vmem:[%s574_s30 + $0x30] sm:$0xff] %v339_v44  ;;  %v318_v45 = vpop.f32.mrf.mxu2  ;;  %v328_v46 = vpop.f32.mrf.mxu3 }
  0xb1   : > { %v319_v47 = vadd.f32 %v507_v14, %v318_v45  ;;  %v329_v48 = vadd.f32 %v507_v14, %v328_v46  ;;  %v300_v49 = vpop.f32.mrf.mxu0  ;;  %v310_v50 = vpop.f32.mrf.mxu1 }
  0xb2   : > { %v301_v51 = vadd.f32 %v507_v14, %v300_v49  ;;  %v311_v52 = vadd.f32 %v507_v14, %v310_v50 }
  0xb3   : > { %v343_v53 = vmax.f32 %v319_v47, 0.0  ;;  %v347_v54 = vmax.f32 %v329_v48, 0.0 }
  0xb4   : > { %v336_v55 = vmax.f32 %v301_v51, 0.0  ;;  %v340_v56 = vmax.f32 %v311_v52, 0.0 }
  0xb5   : > { %359 = vst [vmem:[%s574_s30 + $0x50] sm:$0xff] %v343_v53 }
  0xb6   : > { %363 = vst [vmem:[%s574_s30 + $0x70] sm:$0xff] %v347_v54 }
  0xb7   : > { %352 = vst [vmem:[%s574_s30 + $0x18] sm:$0xff] %v336_v55 }
  0xb8   : > { %356 = vst [vmem:[%s574_s30 + $0x38] sm:$0xff] %v340_v56  ;;  %v320_v57 = vpop.f32.mrf.mxu2  ;;  %v330_v58 = vpop.f32.mrf.mxu3 }
  0xb9   : > { %v321_v59 = vadd.f32 %v507_v14, %v320_v57  ;;  %v331_v60 = vadd.f32 %v507_v14, %v330_v58 }
  0xbb   : > { %v344_v61 = vmax.f32 %v321_v59, 0.0  ;;  %v348_v62 = vmax.f32 %v331_v60, 0.0 }
  0xbd   : > { %360 = vst [vmem:[%s574_s30 + $0x58] sm:$0xff] %v344_v61 }
  0xbe   : > { %364 = vst [vmem:[%s574_s30 + $0x78] sm:$0xff] %v348_v62 }
  0xbf PF: > { %s13_s12 = sadd.s32 1, %s514_s12  }
  0xc0   : > { %p10_p4 = scmp.ge.s32.totalorder %s13_s12, 6  }
  0xc2   :  { %12 = sbr.rel (!%p10_p4) target bundleno = 1 (0x1), region = 62 }

</bundles_post_ra>
